<compile_context>
chip_gen: v7x
topology: tpu7x:2x2x1
jax: 0.10.0
libtpu: 0.0.40
codegen_flags: <defaults>
</compile_context>

<pallas_src>
import math
import numpy as np

import jax
import jax.numpy as jnp
from jax import lax
from jax.experimental import pallas as pl
from jax.experimental.pallas import tpu as pltpu


def _round_up(x, m):
    return (x + m - 1) // m * m


def _divisors_desc(n):
    return sorted([d for d in range(1, n + 1) if n % d == 0], reverse=True)


# ----------------------------------------------------------------------------
# Kernel: one (batch, H-tile) step of the 3x3 "same" conv as a single matmul.
#   x_ref: (1, H+2, W+2, C) bf16 — whole zero-padded NHWC image of batch b
#          (resident across the NT H-tile steps of this batch element).
#   w_ref: (9C, D)          bf16 — flattened conv weight, rows ordered (dh,dw,c).
#   o_ref: (1, TH*W, D)     f32  — output pixels of this H-tile, row-major (h,w).
# ----------------------------------------------------------------------------
def _patch_embed_kernel(x_ref, w_ref, o_ref):
    Wp2, C = x_ref.shape[2], x_ref.shape[3]
    W = Wp2 - 2
    TH = o_ref.shape[1] // W

    t = pl.program_id(1)
    h0 = t * TH  # first padded input row needed == first output row of tile t

    # Build the (TH*W, 9C) im2col LHS in-register: per dh, load the TH-row
    # slab once (dynamic slice on an outer, untiled dim -> address math only),
    # take the three dw windows, merge leading dims (lane dim unchanged), and
    # concatenate the 9 taps along lanes.  No VMEM scratch store+reload.
    taps = []
    for dh in range(3):
        rows = x_ref[0, pl.ds(h0 + dh, TH), :, :]        # (TH, W+2, C)
        for dw in range(3):
            tap = rows[:, dw:dw + W, :]                  # (TH, W, C)
            taps.append(tap.reshape(TH * W, C))          # leading-dim merge only
    lhs = jnp.concatenate(taps, axis=-1)                 # (TH*W, 9C)

    # Single MXU pass: (TH*W, 9C) @ (9C, D), bf16 operands, f32 accumulate.
    out = jnp.dot(lhs, w_ref[...], preferred_element_type=jnp.float32)
    o_ref[0] = out.astype(o_ref.dtype)


# ----------------------------------------------------------------------------
# VMEM-budget-driven H-tile selection (review items 4 & 6).
# ----------------------------------------------------------------------------
def _pick_th(B, C, H, W, D, vmem_budget_bytes):
    LANE = 128
    # Per-image resident input block (bf16): last two dims (W+2, C), so C is
    # lane-padded to 128 in VMEM; Pallas double-buffers it.
    in_bytes = 2 * (H + 2) * _round_up(W + 2, 8) * LANE * 2
    # Resident flattened weight (9C, D), double-buffered.
    w_bytes = 2 * _round_up(9 * C, 8) * _round_up(D, LANE) * 2
    fixed = in_bytes + w_bytes

    def tile_bytes(th):
        out_b = 2 * _round_up(th * W, 8) * _round_up(D, LANE) * 4    # f32 out dbl-buf
        lhs_b = _round_up(th * W, 8) * _round_up(9 * C, LANE) * 2    # concat LHS
        tmp_b = 2 * _round_up(th * W, 8) * LANE * 2                  # tap temporaries
        return out_b + lhs_b + tmp_b

    cands = [d for d in _divisors_desc(H) if (d * W) % 8 == 0 or d == H]
    fitting = [th for th in cands if fixed + tile_bytes(th) <= vmem_budget_bytes]
    if not fitting:
        th = cands[-1]                       # smallest aligned divisor (fallback)
    else:
        # Prefer >= 2 tiles per image so the (B, NT) grid has several steps to
        # pipeline / shard across v7x's two TensorCores.
        multi = [th for th in fitting if H // th >= 2]
        th = multi[0] if multi else fitting[0]
    nt = H // th
    working_set = fixed + tile_bytes(th)
    return th, nt, working_set


@jax.jit
def patch_embed2d_pallas(x_nchw, w_eff):
    """x_nchw: (B, C, H, W) f32; w_eff: (D, C, 3, 3) f32 (OIHW).

    Returns (B, H, W, D) f32 — identical (up to bf16 operand rounding) to
    PyTorch's `conv2d(x, w_eff, stride=1, padding=1).permute(0, 2, 3, 1)`,
    i.e. PatchEmbed2D.forward with norm_layer=None.
    """
    B, C, H, W = x_nchw.shape
    D = w_eff.shape[0]

    # Per-generation VMEM budget (v5e/v6e 128 MiB, v7x 64 MiB per TC).
    try:
        vmem_cap = int(pltpu.get_tpu_info().vmem_capacity_bytes)
    except Exception:
        vmem_cap = 64 * 1024 * 1024
    TH, NT, working_set = _pick_th(B, C, H, W, D, vmem_budget_bytes=vmem_cap // 2)
    vmem_limit = int(min(vmem_cap, max(32 * 1024 * 1024, int(working_set * 1.5))))

    # ---- input: ONE fused pad/transpose/cast pass; no overlapping-tile stack,
    #      no per-tile halo row duplication in HBM (review item 1). ----------
    x_nhwc = jnp.transpose(x_nchw, (0, 2, 3, 1))                    # (B, H, W, C)
    x_pad = jnp.pad(x_nhwc, ((0, 0), (1, 1), (1, 1), (0, 0))).astype(jnp.bfloat16)
    # TODO(synk): for very large H*W, replace the per-batch resident input
    # block with manual halo DMA from memory_space=pl.ANY (bounded per-step
    # VMEM, no C->128 lane padding of a whole image) and fold the 1-px zero
    # halo + bf16 cast into the kernel (review item 8).

    # ---- weight: flatten once, rows ordered (dh, dw, c); no lane padding of
    #      D (review item 2). ------------------------------------------------
    w_flat = jnp.transpose(w_eff, (2, 3, 1, 0)).reshape(9 * C, D).astype(jnp.bfloat16)

    grid_spec = pltpu.PrefetchScalarGridSpec(
        num_scalar_prefetch=0,
        grid=(B, NT),
        in_specs=[
            # Whole padded image of batch b: block index depends only on b, so
            # the DMA runs once per batch element and the block stays resident
            # across the NT H-tile steps (input read from HBM exactly once).
            pl.BlockSpec((1, H + 2, W + 2, C), lambda b, t: (b, 0, 0, 0)),
            # Flattened weight resident for the whole grid.
            pl.BlockSpec((9 * C, D), lambda b, t: (0, 0)),
        ],
        # Output last dim is exactly D: masked vst but minimal HBM writeback,
        # no 128-pad + post-slice copy (review item 2).
        out_specs=pl.BlockSpec((1, TH * W, D), lambda b, t: (b, t, 0)),
    )

    out = pl.pallas_call(
        _patch_embed_kernel,
        out_shape=jax.ShapeDtypeStruct((B, H * W, D), jnp.float32),
        grid_spec=grid_spec,
        compiler_params=pltpu.CompilerParams(
            dimension_semantics=("parallel", "parallel"),
            vmem_limit_bytes=vmem_limit),
    )(x_pad, w_flat)

    # (B, H*W, D) -> (B, H, W, D): pure metadata reshape (no copy, no slice).
    return out.reshape(B, H, W, D)


# ----------------------------------------------------------------------------
# harm3x3 parameterization: fixed 3x3 DCT basis + learned (D, C, 9) weight.
# ----------------------------------------------------------------------------
def dct_filters_3x3():
    k = 3
    filt = np.zeros((k * k, k, k), np.float32)
    idx = 0
    for u in range(k):
        for v in range(k):
            for i in range(k):
                for j in range(k):
                    filt[idx, i, j] = (math.cos(math.pi * (i + 0.5) * u / k) *
                                       math.cos(math.pi * (j + 0.5) * v / k))
            idx += 1
    return jnp.asarray(filt)


def make_harm3x3_weights(key, in_chans, embed_dim):
    # Learned coefficients over the DCT basis (deterministic, synthetic).
    coeff = jax.random.normal(key, (embed_dim, in_chans, 9), jnp.float32) * 0.02
    dct = dct_filters_3x3()                                     # (9, 3, 3)
    # Effective OIHW conv filter (what Harm2d composes at forward time).
    w_eff = jnp.einsum("ock,kij->ocij", coeff, dct)             # (D, C, 3, 3)
    return w_eff
    # norm_layer=None in the default module, so there is no LayerNorm branch.


if __name__ == "__main__":
    key = jax.random.PRNGKey(0)
    kx, kw = jax.random.split(key)

    B, C, H, W = 2, 4, 16, 16
    embed_dim = 32

    x = jax.random.normal(kx, (B, C, H, W), jnp.float32)
    w_eff = make_harm3x3_weights(kw, C, embed_dim)

    out = patch_embed2d_pallas(x, w_eff)
    out = jax.block_until_ready(out)
    assert out.shape == (B, H, W, embed_dim)

    # Reference: same bf16-rounded operands, f32 conv math (matches the
    # kernel's bf16-operand / f32-accumulate MXU path), SAME pad, NHWC permute.
    x_r = x.astype(jnp.bfloat16).astype(jnp.float32)
    w_r = w_eff.astype(jnp.bfloat16).astype(jnp.float32)
    ref = lax.conv_general_dilated(
        x_r, w_r, window_strides=(1, 1), padding="SAME",
        dimension_numbers=("NCHW", "OIHW", "NCHW"),
        precision=lax.Precision.HIGHEST)
    ref = jnp.transpose(ref, (0, 2, 3, 1))
    np.testing.assert_allclose(np.asarray(out), np.asarray(ref),
                               rtol=1e-2, atol=1e-2)

    print("KERNEL_OK")
</pallas_src>

<mosaic_0001>
module attributes {stable_mosaic.version = 11 : i64} {
  func.func @_patch_embed_kernel(%arg0: i32, %arg1: i32, %arg2: memref<1x18x18x4xbf16, #tpu.memory_space<vmem>>, %arg3: memref<36x32xbf16, #tpu.memory_space<vmem>>, %arg4: memref<1x128x32xf32, #tpu.memory_space<vmem>>) attributes {dimension_semantics = [#tpu.dimension_semantics<parallel>, #tpu.dimension_semantics<parallel>], iteration_bounds = array<i64: 2, 2>, scalar_prefetch = 0 : i64, scratch_operands = 0 : i64, tpu.core_type = #tpu.core_type<tc>, window_params = [{transform_indices = @transform_0, window_bounds = array<i64: 1, 18, 18, 4>}, {pipeline_mode = #tpu.pipeline_mode<synchronous>, transform_indices = @transform_1, window_bounds = array<i64: 36, 32>}, {transform_indices = @transform_2, window_bounds = array<i64: 1, 128, 32>}]} {
    %c8_i32 = arith.constant 8 : i32
    %0 = arith.muli %arg1, %c8_i32 : i32
    %c0_i32 = arith.constant 0 : i32
    %1 = arith.addi %0, %c0_i32 : i32
    %c0 = arith.constant 0 : index
    %2 = arith.index_cast %1 : i32 to index
    %c0_0 = arith.constant 0 : index
    %c0_1 = arith.constant 0 : index
    %3 = vector.load %arg2[%c0, %2, %c0_0, %c0_1] : memref<1x18x18x4xbf16, #tpu.memory_space<vmem>>, vector<1x8x18x4xbf16>
    %4 = vector.shape_cast %3 : vector<1x8x18x4xbf16> to vector<8x18x4xbf16>
    %5 = vector.extract_strided_slice %4 {offsets = [0, 0, 0], sizes = [8, 16, 4], strides = [1, 1, 1]} : vector<8x18x4xbf16> to vector<8x16x4xbf16>
    %6 = vector.shape_cast %5 : vector<8x16x4xbf16> to vector<128x4xbf16>
    %7 = vector.extract_strided_slice %4 {offsets = [0, 1, 0], sizes = [8, 16, 4], strides = [1, 1, 1]} : vector<8x18x4xbf16> to vector<8x16x4xbf16>
    %8 = vector.shape_cast %7 : vector<8x16x4xbf16> to vector<128x4xbf16>
    %9 = vector.extract_strided_slice %4 {offsets = [0, 2, 0], sizes = [8, 16, 4], strides = [1, 1, 1]} : vector<8x18x4xbf16> to vector<8x16x4xbf16>
    %10 = vector.shape_cast %9 : vector<8x16x4xbf16> to vector<128x4xbf16>
    %c1_i32 = arith.constant 1 : i32
    %11 = arith.addi %0, %c1_i32 : i32
    %c0_2 = arith.constant 0 : index
    %12 = arith.index_cast %11 : i32 to index
    %c0_3 = arith.constant 0 : index
    %c0_4 = arith.constant 0 : index
    %13 = vector.load %arg2[%c0_2, %12, %c0_3, %c0_4] : memref<1x18x18x4xbf16, #tpu.memory_space<vmem>>, vector<1x8x18x4xbf16>
    %14 = vector.shape_cast %13 : vector<1x8x18x4xbf16> to vector<8x18x4xbf16>
    %15 = vector.extract_strided_slice %14 {offsets = [0, 0, 0], sizes = [8, 16, 4], strides = [1, 1, 1]} : vector<8x18x4xbf16> to vector<8x16x4xbf16>
    %16 = vector.shape_cast %15 : vector<8x16x4xbf16> to vector<128x4xbf16>
    %17 = vector.extract_strided_slice %14 {offsets = [0, 1, 0], sizes = [8, 16, 4], strides = [1, 1, 1]} : vector<8x18x4xbf16> to vector<8x16x4xbf16>
    %18 = vector.shape_cast %17 : vector<8x16x4xbf16> to vector<128x4xbf16>
    %19 = vector.extract_strided_slice %14 {offsets = [0, 2, 0], sizes = [8, 16, 4], strides = [1, 1, 1]} : vector<8x18x4xbf16> to vector<8x16x4xbf16>
    %20 = vector.shape_cast %19 : vector<8x16x4xbf16> to vector<128x4xbf16>
    %c2_i32 = arith.constant 2 : i32
    %21 = arith.addi %0, %c2_i32 : i32
    %c0_5 = arith.constant 0 : index
    %22 = arith.index_cast %21 : i32 to index
    %c0_6 = arith.constant 0 : index
    %c0_7 = arith.constant 0 : index
    %23 = vector.load %arg2[%c0_5, %22, %c0_6, %c0_7] : memref<1x18x18x4xbf16, #tpu.memory_space<vmem>>, vector<1x8x18x4xbf16>
    %24 = vector.shape_cast %23 : vector<1x8x18x4xbf16> to vector<8x18x4xbf16>
    %25 = vector.extract_strided_slice %24 {offsets = [0, 0, 0], sizes = [8, 16, 4], strides = [1, 1, 1]} : vector<8x18x4xbf16> to vector<8x16x4xbf16>
    %26 = vector.shape_cast %25 : vector<8x16x4xbf16> to vector<128x4xbf16>
    %27 = vector.extract_strided_slice %24 {offsets = [0, 1, 0], sizes = [8, 16, 4], strides = [1, 1, 1]} : vector<8x18x4xbf16> to vector<8x16x4xbf16>
    %28 = vector.shape_cast %27 : vector<8x16x4xbf16> to vector<128x4xbf16>
    %29 = vector.extract_strided_slice %24 {offsets = [0, 2, 0], sizes = [8, 16, 4], strides = [1, 1, 1]} : vector<8x18x4xbf16> to vector<8x16x4xbf16>
    %30 = vector.shape_cast %29 : vector<8x16x4xbf16> to vector<128x4xbf16>
    %31 = tpu.concatenate %6, %8, %10, %16, %18, %20, %26, %28, %30 in 1 : vector<128x4xbf16>, vector<128x4xbf16>, vector<128x4xbf16>, vector<128x4xbf16>, vector<128x4xbf16>, vector<128x4xbf16>, vector<128x4xbf16>, vector<128x4xbf16>, vector<128x4xbf16> -> vector<128x36xbf16>
    %c0_8 = arith.constant 0 : index
    %c0_9 = arith.constant 0 : index
    %32 = vector.load %arg3[%c0_8, %c0_9] : memref<36x32xbf16, #tpu.memory_space<vmem>>, vector<36x32xbf16>
    %cst = arith.constant dense<0.000000e+00> : vector<128x32xf32>
    %33 = tpu.matmul %31, %32, %cst {dimension_numbers = #tpu.dot_dimension_numbers<[1], [0], [0], [1], [0, 0, 1, 1], [], []>} : vector<128x36xbf16>, vector<36x32xbf16>, vector<128x32xf32> -> vector<128x32xf32>
    %c0_10 = arith.constant 0 : index
    %c0_11 = arith.constant 0 : index
    %c0_12 = arith.constant 0 : index
    %34 = vector.load %arg4[%c0_10, %c0_11, %c0_12] : memref<1x128x32xf32, #tpu.memory_space<vmem>>, vector<1x128x32xf32>
    %35 = vector.shape_cast %34 : vector<1x128x32xf32> to vector<128x32xf32>
    %36 = vector.shape_cast %33 : vector<128x32xf32> to vector<1x128x32xf32>
    tpu.vector_store %arg4[%c0_10, %c0_11, %c0_12], %36 {strides = array<i32>} : memref<1x128x32xf32, #tpu.memory_space<vmem>>, vector<1x128x32xf32>,
    return
  }
  func.func @transform_0(%arg0: i32, %arg1: i32) -> (i32, i32, i32, i32) {
    %c0_i32 = arith.constant 0 : i32
    %c0_i32_0 = arith.constant 0 : i32
    %c0_i32_1 = arith.constant 0 : i32
    %c0_i32_2 = arith.constant 0 : i32
    return %arg0, %c0_i32, %c0_i32_0, %c0_i32_1 : i32, i32, i32, i32
  }
  func.func @transform_1(%arg0: i32, %arg1: i32) -> (i32, i32) {
    %c0_i32 = arith.constant 0 : i32
    %c0_i32_0 = arith.constant 0 : i32
    %c0_i32_1 = arith.constant 0 : i32
    return %c0_i32, %c0_i32_0 : i32, i32
  }
  func.func @transform_2(%arg0: i32, %arg1: i32) -> (i32, i32, i32) {
    %c0_i32 = arith.constant 0 : i32
    %c0_i32_0 = arith.constant 0 : i32
    return %arg0, %arg1, %c0_i32 : i32, i32, i32
  }
}

</mosaic_0001>

<bundles_post_ra>
// kernel: patch_embed2d_pallas.1
= control target key start
LH: loop header
LB: loop body
LE: loop exit
PB: predicated region body
PF: predicated region fallthrough
CT: control target
= control target key end

     0   :  { %7 = vsyncpa [#allocation3], 0  ;;  %s3305_s0 = inlined_call_operand.vmem [shape: bf16[2,18,18,4], index: 0, kind: input, shape index: {}]   ;;  %s3306_s1 = inlined_call_operand.vmem [shape: bf16[36,32], index: 1, kind: input, shape index: {}]   ;;  %s3307_s2 = inlined_call_operand.hbm [shape: f32[2,256,32], index: 2, kind: output, shape index: {}]  }
   0x1   :  { %9 = vsyncpa [#allocation3 + $0x1], 0  ;;  %s2264_s9 = smov 0   ;;  %s2266_s10 = smov 0  }
   0x2   :  { %s2268_s11 = smov 0   ;;  %s2270_s12 = smov 0  }
   0x3   :  { %s2272_s13 = smov 0   ;;  %s2274_s14 = smov 0  }
   0x4   :  { %s2276_s15 = smov 0   ;;  %s2278_s16 = smov 0  }
   0x5 LB: > { %s1808_s17 = sadd.s32 4294967295, %s2237_s16   ;;  %s1809_s18 = sadd.s32 4294967294, %s2237_s16   ;;  %s2237_s16 = sphi %s2278_s16, %s15_s16   ;;  %s2233_s15 = sphi %s2276_s15, %s3320_s15   ;;  %s2229_s14 = sphi %s2274_s14, %s3319_s14   ;;  %s2225_s13 = sphi %s2272_s13, %s3318_s13   ;;  %s2221_s12 = sphi %s2270_s12, %s3317_s12   ;;  %s2217_s11 = sphi %s2268_s11, %s3316_s11   ;;  %s2213_s10 = sphi %s2266_s10, %s3315_s10   ;;  %s2209_s9 = sphi %s2264_s9, %s3314_s9  }
   0x6   : > { %s24_s19 = sadd.s32 1, %s2229_s14  ;;  %s27_s20 = sadd.s32 1, %s2233_s15 }
   0x7   : > { %p25_p0 = scmp.ge.s32.totalorder %s24_s19, 2  ;;  %p93_p1 = scmp.ne.s32.totalorder %s2217_s11, %s2213_s10 }
   0x8   : > { %p94_p2 = scmp.eq.s32.totalorder %s1808_s17, 3  ;;  %p99_p5 = scmp.ne.s32.totalorder %s2213_s10, %s2209_s9 }
   0x9   : > { %s3322_s19 = smov (%p25_p0, %s24_s19), 0  ;;  %s3324_s20 = smov (!%p25_p0, %s27_s20), %s2233_s15 }
   0xa   : > { %s79_s21 = ssub.s32 %s2229_s14, %s3322_s19  ;;  %p2315_p3 = por %p94_p2, %p93_p1 }
   0xb   : > { %p29_p4 = scmp.ge.s32.totalorder %s3324_s20, 2  ;;  %p100_p6 = scmp.eq.s32.totalorder %s1809_s18, 3 }
   0xc   : > { %p1812_p7 = scmp.ge.s32.totalorder %s2237_s16, 1  ;;  %p129_p9 = scmp.lt.s32.totalorder %s2237_s16, 5 }
   0xd   : > { %s3326_s20 = smov (%p29_p4, %s3324_s20), 0  ;;  %p2324_p8 = por %p100_p6, %p99_p5 }
   0xe   : > { %s78_s24 = ssub.s32 %s2233_s15, %s3326_s20  ;;  %s83_s25 = sadd.s32 1, %s2217_s11 }
   0xf   : > { %s80_s26 = sor.u32 %s79_s21, %s78_s24  ;;  %p130_p10 = pnand %p1812_p7, %p129_p9 }
  0x10   : > { %p81_p11 = scmp.eq.s32.totalorder %s80_s26, 0  ;;  %p151_p12 = scmp.lt.s32.totalorder (!%p130_p10), %s2225_s13, 1  ;;  %vm405_vm0 = vcmask (!%p130_p10), 1042432   ;;  %vm406_vm1 = vcmask (!%p130_p10), 1046532   ;;  %vm186_vm3 = vsmask.f32 (!%p130_p10), 3328 }
  0x11   : > { %133 = sbr.rel (%p130_p10) target bundleno = 533 (0x215), region = 28  ;;  %s2239_s7 = smov (!%p130_p10), 12   ;;  %vm2415_vm2 = vmor (!%p130_p10), %vm405_vm0, %vm406_vm1  ;;  %vm187_vm4 = vsmask.f32 (!%p130_p10), 7440  ;;  %vm1589_vm6 = vcmask (!%p130_p10), 1041408   ;;  %vm1408_vm7 = vcmask (!%p130_p10), 31744  }
  0x12   : > { %s2333_s27 = scalar_select %p81_p11, %s2217_s11, %s83_s25  }
  0x13   : > { %s1983_s29 = smul.u32 (!%p130_p10), 96, %s2221_s12  ;;  %s2240_s8 = smov (!%p130_p10), 8   ;;  %vm2474_vm5 = vmor (!%p130_p10), %vm186_vm3, %vm187_vm4  ;;  %vm1433_vm8 = vcmask (!%p130_p10), 64512   ;;  %vm1450_vm9 = vcmask (!%p130_p10), 97280   ;;  %vm1467_vm10 = vcmask (!%p130_p10), 130048   ;;  %vm1484_vm11 = vcmask (!%p130_p10), 162816  }
  0x14   : > { %s2241_s17 = smov (!%p130_p10), 4   ;;  %s2242_s18 = smov (!%p130_p10), 16   ;;  %vm1501_vm12 = vcmask (!%p130_p10), 195584   ;;  %vm1518_vm13 = vcmask (!%p130_p10), 228352   ;;  %vm1535_vm14 = vcmask (!%p130_p10), 261120   ;;  %vm1572_vm15 = vcmask (!%p130_p10), 293888  }
  0x15   : > { %s2243_s21 = smov (!%p130_p10), 20   ;;  %s2244_s24 = smov (!%p130_p10), 24  }
  0x16   : > { %s2246_s3 = smov (!%p130_p10), 32  }
  0x18   : > { %s152_s28 = scalar_select %p151_p12, %s2225_s13, 1 }
  0x1a   : > { %s2025_s30 = smul.u32 216, %s152_s28 }
  0x1c   : > { %s155_s5 = scalar_lea.vmem %s3305_s0, %s2025_s30  ;;  %s2245_s30 = smov 28  }
  0x1d   : > { %s2341_s6 = scalar_lea.vmem %s155_s5, %s1983_s29 }
  0x1e   : > { %v2344_v0 = vld [vmem:[%s2341_s6 + $0x3c] sm:$0xf]  ;;  %v2347_v1 = vld [vmem:[%s2341_s6 + $0x40] sm:$0xf]  ;;  %v2350_v2 = vld [vmem:[%s2341_s6 + $0xc] sm:$0xf] }
  0x1f   : > { %v598_v3 = vshll.u32 %v2347_v1, 16  ;;  %v602_v4 = vshrl.u32 %v2347_v1, 16  ;;  %v1922_v5 = vcombine.low %v2344_v0, %v2347_v1  ;;  %v589_v6 = vshrl.u32 %v2344_v0, 16  ;;  %v2358_v7 = vld [vmem:[%s2341_s6 + $0x10] sm:$0xf] }
  0x20   : > { %v592_v8 = vshll.u32 %v2344_v0, 16  ;;  %v502_v9 = vshll.u32 %v2358_v7, 16  ;;  %v506_v10 = vshrl.u32 %v2358_v7, 16  ;;  %v1918_v11 = vcombine.low %v2350_v2, %v2358_v7  ;;  %v2366_v12 = vld [vmem:[%s2341_s6 + $0x48] sm:$0xf] }
  0x21   : > { %v2368_v13 = vrot.slane %v602_v4, 4  ;;  %1200 = vrot.lane.b32.xlu1 %v1922_v5, %s2239_s7  ;;  %v2371_v14 = vrot.slane %v589_v6, 4  ;;  %v493_v15 = vshrl.u32 %v2350_v2, 16  ;;  %v496_v16 = vshll.u32 %v2350_v2, 16  ;;  %v2376_v17 = vld [vmem:[%s2341_s6 + $0x4c] sm:$0xf] }
  0x22   : > { %v2378_v18 = vrot.slane %v592_v8, 5  ;;  %v2380_v19 = vrot.slane %v506_v10, 4  ;;  %1192 = vrot.lane.b32.xlu0 %v1918_v11, %s2239_s7  ;;  %v613_v20 = vshrl.u32 %v2366_v12, 16  ;;  %v616_v21 = vshll.u32 %v2366_v12, 16  ;;  %v2386_v22 = vld [vmem:[%s2341_s6 + $0x18] sm:$0xf] }
  0x23   : > { %v2388_v23 = vrot.slane %v493_v15, 4  ;;  %v2390_v24 = vrot.slane %v496_v16, 5  ;;  %v626_v25 = vshrl.u32 %v2376_v17, 16  ;;  %v1923_v26 = vcombine.low %v2366_v12, %v2376_v17  ;;  %v2396_v27 = vld [vmem:[%s2341_s6 + $0x1c] sm:$0xf] }
  0x24   : > { %v517_v28 = vshrl.u32 %v2386_v22, 16  ;;  %v520_v29 = vshll.u32 %v2386_v22, 16  ;;  %v530_v30 = vshrl.u32 %v2396_v27, 16  ;;  %v1919_v31 = vcombine.low %v2386_v22, %v2396_v27  ;;  %v2404_v32 = vld [vmem:[%s2341_s6 + $0x30] sm:$0xf] }
  0x25   : > { %1202 = vrot.lane.b32.xlu1 %v1923_v26, %s2239_s7  ;;  %v2408_v33 = vld [vmem:[%s2341_s6 + $0x34] sm:$0xf]  ;;  %v2411_v34 = vld [vmem:[%s2341_s6 + $0x38] sm:$0x1]  ;;  %v1822_v36 = vrot.slane %v2404_v32, 9  ;;  %v286_v37 = vshrl.u32 %v2404_v32, 16  ;;  %v595_v51 = vor.u32 %v2378_v18, %v2371_v14  ;;  %v499_v62 = vor.u32 %v2390_v24, %v2388_v23 }
  0x26   : > { %1194 = vrot.lane.b32.xlu0 %v1919_v31, %s2239_s7  ;;  %v438_v38 = vrot.slane %v2408_v33, 5  ;;  %v441_v39 = vrot.slane %v2411_v34, 5  ;;  %v162_v40 = vld [vmem:[%s2341_s6] sm:$0xf]  ;;  %v2426_v41 = vld [vmem:[%s2341_s6 + $0x4] sm:$0xf] }
  0x27   : > { %v2429_v42 = vld [vmem:[%s2341_s6 + $0x8] sm:$0x1]  ;;  %v1818_v43 = vrot.slane %v162_v40, 9  ;;  %v410_v44 = vrot.slane %v2426_v41, 5  ;;  %v2433_v45 = vld [vmem:[%s2341_s6 + $0x3c] sm:$0xf] }
  0x28   : > { %v439_v46 = vsel %vm2415_vm2, %v1822_v36, %v438_v38  ;;  %v440_v47 = vrot.slane %v438_v38, 4  ;;  %v413_v48 = vrot.slane %v2429_v42, 5  ;;  %v2439_v49 = vld [vmem:[%s2341_s6 + $0x40] sm:$0xf]  ;;  %v2442_v50 = vld [vmem:[%s2341_s6 + $0x44] sm:$0x1] }
  0x29   : > { %v411_v52 = vsel %vm2415_vm2, %v1818_v43, %v410_v44  ;;  %v412_v53 = vrot.slane %v410_v44, 4  ;;  %v1823_v54 = vrot.slane %v2433_v45, 9  ;;  %v445_v55 = vrot.slane %v2439_v49, 5  ;;  %v165_v56 = vld [vmem:[%s2341_s6 + $0xc] sm:$0xf] }
  0x2a   : > { %v442_v57 = vsel %vm2415_vm2, %v440_v47, %v441_v39  ;;  %v448_v58 = vrot.slane %v2442_v50, 5  ;;  %v166_v59 = vld [vmem:[%s2341_s6 + $0x10] sm:$0xf]  ;;  %v167_v60 = vld [vmem:[%s2341_s6 + $0x14] sm:$0x1]  ;;  %v1819_v61 = vrot.slane %v165_v56, 9 }
  0x2b   : > { %v1914_v63 = vcombine.low %v439_v46, %v442_v57  ;;  %v414_v4 = vsel %vm2415_vm2, %v412_v53, %v413_v48  ;;  %v446_v5 = vsel %vm2415_vm2, %v1823_v54, %v445_v55  ;;  %v447_v6 = vrot.slane %v445_v55, 4 }
  0x2c   : > { %v1910_v8 = vcombine.low %v411_v52, %v414_v4  ;;  %v417_v10 = vrot.slane %v166_v59, 5  ;;  %v420_v11 = vrot.slane %v167_v60, 5  ;;  %v214_v15 = vshrl.u32 %v165_v56, 16 }
  0x2d   : > { %1160 = vrot.lane.b32.xlu1 %v1914_v63, %s2240_s8  ;;  %v449_v16 = vsel %vm2415_vm2, %v447_v6, %v448_v58  ;;  %v217_v26 = vshll.u32 %v165_v56, 16  ;;  %v223_v31 = vshll.u32 %v166_v59, 16  ;;  %v227_v36 = vshrl.u32 %v166_v59, 16 }
  0x2e   : > { %1152 = vrot.lane.b32.xlu0 %v1910_v8, %s2240_s8  ;;  %v1915_v38 = vcombine.low %v446_v5, %v449_v16  ;;  %v418_v39 = vsel %vm2415_vm2, %v1819_v61, %v417_v10  ;;  %v419_v43 = vrot.slane %v417_v10, 4  ;;  %v216_v44 = vrot.slane %v214_v15, 4 }
  0x2f   : > { %v219_v46 = vrot.slane %v217_v26, 5  ;;  %v225_v47 = vrot.slane %v223_v31, 5  ;;  %v229_v48 = vrot.slane %v227_v36, 4  ;;  %v233_v52 = vshll.u32 %v167_v60, 16 }
  0x30   : > { %v421_v53 = vsel %vm2415_vm2, %v419_v43, %v420_v11  ;;  %v190_v54 = vshrl.u32 %v162_v40, 16  ;;  %v193_v55 = vshll.u32 %v162_v40, 16  ;;  %v199_v56 = vshll.u32 %v2426_v41, 16 }
  0x31   : > { %1162 = vrot.lane.b32.xlu1 %v1915_v38, %s2240_s8  ;;  %v1911_v57 = vcombine.low %v418_v39, %v421_v53  ;;  %v220_v58 = vor.u32 %v219_v46, %v216_v44  ;;  %v230_v59 = vor.u32 %v229_v48, %v225_v47  ;;  %v235_v63 = vrot.slane %v233_v52, 5 }
  0x32   : > { %v192_v60 = vrot.slane %v190_v54, 4  ;;  %v195_v4 = vrot.slane %v193_v55, 5  ;;  %v201_v5 = vrot.slane %v199_v56, 5  ;;  %v203_v6 = vshrl.u32 %v2426_v41, 16 }
  0x33   : > { %1154 = vrot.lane.b32.xlu0 %v1911_v57, %s2240_s8  ;;  %v221_v40 = vrot.slane %v220_v58, 4  ;;  %v231_v8 = vrot.slane %v230_v59, 4  ;;  %v209_v10 = vshll.u32 %v2429_v42, 16  ;;  %v310_v11 = vshrl.u32 %v2433_v45, 16 }
  0x34   : > { %v196_v15 = vor.u32 %v195_v4, %v192_v60  ;;  %v205_v16 = vrot.slane %v203_v6, 4  ;;  %v313_v26 = vshll.u32 %v2433_v45, 16  ;;  %v319_v31 = vshll.u32 %v2439_v49, 16  ;;  %v2502_v4 = vld [vmem:[%s2341_s6 + $0x44] sm:$0x1] }
  0x35   : > { %v226_v36 = vsel %vm2474_vm5, %v221_v40, %v225_v47  ;;  %v236_v41 = vsel %vm2474_vm5, %v231_v8, %v235_v63  ;;  %v211_v38 = vrot.slane %v209_v10, 5  ;;  %v312_v39 = vrot.slane %v310_v11, 4 }
  0x36   : > { %v1903_v43 = vcombine.low %v226_v36, %v236_v41  ;;  %v197_v44 = vrot.slane %v196_v15, 4  ;;  %v206_v46 = vor.u32 %v205_v16, %v201_v5  ;;  %v315_v42 = vrot.slane %v313_v26, 5 }
  0x37   : > { %v321_v48 = vrot.slane %v319_v31, 5  ;;  %v323_v52 = vshrl.u32 %v2439_v49, 16  ;;  %v329_v53 = vshll.u32 %v2442_v50, 16  ;;  %v288_v45 = vrot.slane %v286_v37, 4 }
  0x38   : > { %1114 = vrot.lane.b32.xlu1 %v1903_v43, %s2241_s17  ;;  %v202_v47 = vsel %vm2474_vm5, %v197_v44, %v201_v5  ;;  %v207_v54 = vrot.slane %v206_v46, 4  ;;  %v316_v55 = vor.u32 %v315_v42, %v312_v39  ;;  %v289_v56 = vshll.u32 %v2404_v32, 16  ;;  %v2505_v32 = vld [vmem:[%s2341_s6 + $0x14] sm:$0x1] }
  0x39   : > { %v325_v57 = vrot.slane %v323_v52, 4  ;;  %v331_v58 = vrot.slane %v329_v53, 5  ;;  %v295_v49 = vshll.u32 %v2408_v33, 16  ;;  %v299_v50 = vshrl.u32 %v2408_v33, 16 }
  0x3a   : > { %v212_v37 = vsel %vm2474_vm5, %v207_v54, %v211_v38  ;;  %v317_v59 = vrot.slane %v316_v55, 4  ;;  %v291_v63 = vrot.slane %v289_v56, 5  ;;  %v305_v60 = vshll.u32 %v2411_v34, 16 }
  0x3b   : > { %v1902_v5 = vcombine.low %v202_v47, %v212_v37  ;;  %v326_v6 = vor.u32 %v325_v57, %v321_v48  ;;  %v297_v40 = vrot.slane %v295_v49, 5  ;;  %v301_v8 = vrot.slane %v299_v50, 4 }
  0x3c   : > { %v322_v10 = vsel %vm2474_vm5, %v317_v59, %v321_v48  ;;  %v292_v11 = vor.u32 %v291_v63, %v288_v45  ;;  %v307_v33 = vrot.slane %v305_v60, 5  ;;  %v596_v15 = vrot.slane %v595_v51, 4 }
  0x3d   : > { %1112 = vrot.lane.b32.xlu0 %v1902_v5, %s2241_s17  ;;  %v327_v34 = vrot.slane %v326_v6, 4  ;;  %v302_v16 = vor.u32 %v301_v8, %v297_v40  ;;  %v600_v26 = vrot.slane %v598_v3, 5  ;;  %v608_v31 = vshll.u32 %v2502_v4, 16 }
  0x3e   : > { %v293_v36 = vrot.slane %v292_v11, 4  ;;  %v500_v41 = vrot.slane %v499_v62, 4  ;;  %v504_v38 = vrot.slane %v502_v9, 5  ;;  %v512_v14 = vshll.u32 %v2505_v32, 16  ;;  %v2532_v9 = vld [vmem:[%s2341_s6 + $0x50] sm:$0x1] }
  0x3f   : > { %v332_v18 = vsel %vm2474_vm5, %v327_v34, %v331_v58  ;;  %v303_v51 = vrot.slane %v302_v16, 4  ;;  %v601_v39 = vsel %vm2474_vm5, %v596_v15, %v600_v26  ;;  %v605_v3 = vor.u32 %v2368_v13, %v600_v26 }
  0x40   : > { %v1907_v43 = vcombine.low %v322_v10, %v332_v18  ;;  %v298_v44 = vsel %vm2474_vm5, %v293_v36, %v297_v40  ;;  %v610_v23 = vrot.slane %v608_v31, 5  ;;  %v505_v24 = vsel %vm2474_vm5, %v500_v41, %v504_v38 }
  0x41   : > { %v308_v62 = vsel %vm2474_vm5, %v303_v51, %v307_v33  ;;  %v606_v46 = vrot.slane %v605_v3, 4  ;;  %v509_v42 = vor.u32 %v2380_v19, %v504_v38  ;;  %v514_v48 = vrot.slane %v512_v14, 5 }
  0x42   : > { %1122 = vrot.lane.b32.xlu1 %v1907_v43, %s2241_s17  ;;  %v1906_v13 = vcombine.low %v298_v44, %v308_v62  ;;  %v615_v52 = vrot.slane %v613_v20, 4  ;;  %v618_v53 = vrot.slane %v616_v21, 5  ;;  %v622_v45 = vshll.u32 %v2376_v17, 16  ;;  %v2550_v20 = vld [vmem:[%s2341_s6 + $0x20] sm:$0x1] }
  0x43   : > { %v611_v47 = vsel %vm2474_vm5, %v606_v46, %v610_v23  ;;  %v510_v54 = vrot.slane %v509_v42, 4  ;;  %v628_v55 = vrot.slane %v626_v25, 4  ;;  %v632_v19 = vshll.u32 %v2532_v9, 16  ;;  %v2589_v43 = vld [vmem:[%s2341_s6 + $0x48] sm:$0xf] }
  0x44   : > { %1120 = vrot.lane.b32.xlu0 %v1906_v13, %s2241_s17  ;;  %v1930_v56 = vcombine.low %v601_v39, %v611_v47  ;;  %v619_v57 = vor.u32 %v618_v53, %v615_v52  ;;  %v624_v58 = vrot.slane %v622_v45, 5  ;;  %v519_v21 = vrot.slane %v517_v28, 4  ;;  %v2596_v62 = vld [vmem:[%s2341_s6 + $0x4c] sm:$0xf]  ;;  %v2599_v46 = vld [vmem:[%s2341_s6 + $0x18] sm:$0xf] }
  0x45   : > { %v515_v49 = vsel %vm2474_vm5, %v510_v54, %v514_v48  ;;  %v634_v50 = vrot.slane %v632_v19, 5  ;;  %v522_v37 = vrot.slane %v520_v29, 5  ;;  %v526_v25 = vshll.u32 %v2396_v27, 16  ;;  %v2605_v13 = vld [vmem:[%s2341_s6 + $0x1c] sm:$0xf] }
  0x46   : > { %1240 = vrot.lane.b32.xlu1 %v1930_v56, %s2242_s18  ;;  %v1926_v59 = vcombine.low %v505_v24, %v515_v49  ;;  %v620_v63 = vrot.slane %v619_v57, 4  ;;  %v629_v60 = vor.u32 %v628_v55, %v624_v58  ;;  %v532_v5 = vrot.slane %v530_v30, 4  ;;  %v2613_v45 = vld [vmem:[%s2341_s6 + $0x54] sm:$0xf]  ;;  %v2623_v56 = vld [vmem:[%s2341_s6 + $0x58] sm:$0xf] }
  0x47   : > { %v523_v6 = vor.u32 %v522_v37, %v519_v21  ;;  %v528_v28 = vrot.slane %v526_v25, 5  ;;  %v536_v40 = vshll.u32 %v2550_v20, 16  ;;  %v1856_v8 = vrot.slane %v2344_v0, 9  ;;  %v2626_v57 = vld [vmem:[%s2341_s6 + $0x24] sm:$0xf] }
  0x48   : > { %1232 = vrot.lane.b32.xlu0 %v1926_v59, %s2242_s18  ;;  %v625_v29 = vsel %vm2474_vm5, %v620_v63, %v624_v58  ;;  %v630_v10 = vrot.slane %v629_v60, 4  ;;  %v738_v11 = vrot.slane %v2347_v1, 5  ;;  %v741_v33 = vrot.slane %v2502_v4, 5  ;;  %v2640_v60 = vld [vmem:[%s2341_s6 + $0x50] sm:$0x1] }
  0x49   : > { %v524_v15 = vrot.slane %v523_v6, 4  ;;  %v533_v34 = vor.u32 %v532_v5, %v528_v28  ;;  %v538_v16 = vrot.slane %v536_v40, 5  ;;  %v1852_v30 = vrot.slane %v2350_v2, 9 }
  0x4a   : > { %v635_v26 = vsel %vm2474_vm5, %v630_v10, %v634_v50  ;;  %v739_v0 = vsel %vm2415_vm2, %v1856_v8, %v738_v11  ;;  %v740_v31 = vrot.slane %v738_v11, 4  ;;  %v710_v36 = vrot.slane %v2358_v7, 5  ;;  %v2633_v50 = vld [vmem:[%s2341_s6 + $0x28] sm:$0xf] }
  0x4b   : > { %v1931_v41 = vcombine.low %v625_v29, %v635_v26  ;;  %v529_v1 = vsel %vm2474_vm5, %v524_v15, %v528_v28  ;;  %v534_v4 = vrot.slane %v533_v34, 4  ;;  %v713_v38 = vrot.slane %v2505_v32, 5 }
  0x4c   : > { %v742_v2 = vsel %vm2415_vm2, %v740_v31, %v741_v33  ;;  %v711_v14 = vsel %vm2415_vm2, %v1852_v30, %v710_v36  ;;  %v712_v18 = vrot.slane %v710_v36, 4  ;;  %v1857_v51 = vrot.slane %v2366_v12, 9  ;;  %v2653_v33 = vld [vmem:[%s2341_s6 + $0x20] sm:$0x1] }
  0x4d   : > { %1242 = vrot.lane.b32.xlu1 %v1931_v41, %s2242_s18  ;;  %v539_v7 = vsel %vm2474_vm5, %v534_v4, %v538_v16  ;;  %v1938_v39 = vcombine.low %v739_v0, %v742_v2  ;;  %v745_v3 = vrot.slane %v2376_v17, 5  ;;  %v748_v32 = vrot.slane %v2532_v9, 5 }
  0x4e   : > { %v1927_v44 = vcombine.low %v529_v1, %v539_v7  ;;  %v714_v23 = vsel %vm2415_vm2, %v712_v18, %v713_v38  ;;  %v1853_v12 = vrot.slane %v2386_v22, 9  ;;  %v717_v24 = vrot.slane %v2396_v27, 5 }
  0x4f   : > { %v1934_v42 = vcombine.low %v711_v14, %v714_v23  ;;  %v746_v17 = vsel %vm2415_vm2, %v1857_v51, %v745_v3  ;;  %v747_v9 = vrot.slane %v745_v3, 4  ;;  %v720_v48 = vrot.slane %v2550_v20, 5  ;;  %v2662_v51 = vld [vmem:[%s2341_s6 + $0x5c] sm:$0x1] }
  0x50   : > { %1234 = vrot.lane.b32.xlu0 %v1927_v44, %s2242_s18  ;;  %v718_v22 = vsel %vm2415_vm2, %v1853_v12, %v717_v24  ;;  %v719_v27 = vrot.slane %v717_v24, 4  ;;  %v889_v52 = vshrl.u32 %v2589_v43, 16  ;;  %v892_v53 = vshll.u32 %v2589_v43, 16 }
  0x51   : > { %1280 = vrot.lane.b32.xlu1 %v1938_v39, %s2243_s21  ;;  %v749_v47 = vsel %vm2415_vm2, %v747_v9, %v748_v32  ;;  %v902_v54 = vshrl.u32 %v2596_v62, 16  ;;  %v1946_v55 = vcombine.low %v2589_v43, %v2596_v62  ;;  %v793_v19 = vshrl.u32 %v2599_v46, 16 }
  0x52   : > { %v1939_v58 = vcombine.low %v746_v17, %v749_v47  ;;  %v721_v20 = vsel %vm2415_vm2, %v719_v27, %v720_v48  ;;  %v796_v21 = vshll.u32 %v2599_v46, 16  ;;  %v806_v49 = vshrl.u32 %v2605_v13, 16  ;;  %v2126_v27 = vld [vmem:[%s3306_s1] sm:$0xff]  }
  0x53   : > { %v1935_v37 = vcombine.low %v718_v22, %v721_v20  ;;  %v1942_v25 = vcombine.low %v2599_v46, %v2605_v13  ;;  %v913_v59 = vshrl.u32 %v2613_v45, 16  ;;  %v916_v63 = vshll.u32 %v2613_v45, 16  ;;  %v2678_v20 = vld [vmem:[%s2341_s6 + $0x2c] sm:$0x1]  ;;  %1995 = vmatprep.subr.bf16.mxu0 %v2126_v27  ;;  %2017 = vmatprep.subr.bf16.mxu1 %v2126_v27 }
  0x54   : > { %1272 = vrot.lane.b32.xlu0 %v1934_v42, %s2243_s21  ;;  %v926_v5 = vshrl.u32 %v2623_v56, 16  ;;  %v1947_v6 = vcombine.low %v2613_v45, %v2623_v56  ;;  %v817_v28 = vshrl.u32 %v2626_v57, 16  ;;  %v820_v40 = vshll.u32 %v2626_v57, 16  ;;  %1996 = vmatpush3.bf16.msra.mxu0 %v2126_v27 }
  0x55   : > { %1282 = vrot.lane.b32.xlu1 %v1939_v58, %s2243_s21  ;;  %v830_v8 = vshrl.u32 %v2633_v50, 16  ;;  %v1943_v29 = vcombine.low %v2626_v57, %v2633_v50  ;;  %v891_v10 = vrot.slane %v889_v52, 4  ;;  %v894_v11 = vrot.slane %v892_v53, 5  ;;  %2020 = vmatpush3.bf16.msra.mxu1 %v2126_v27 }
  0x56   : > { %v898_v15 = vshll.u32 %v2596_v62, 16  ;;  %v904_v34 = vrot.slane %v902_v54, 4  ;;  %v908_v16 = vshll.u32 %v2640_v60, 16  ;;  %v795_v30 = vrot.slane %v793_v19, 4 }
  0x57   : > { %v895_v26 = vor.u32 %v894_v11, %v891_v10  ;;  %v798_v0 = vrot.slane %v796_v21, 5  ;;  %v802_v31 = vshll.u32 %v2605_v13, 16  ;;  %v808_v36 = vrot.slane %v806_v49, 4 }
  0x58   : > { %1274 = vrot.lane.b32.xlu0 %v1935_v37, %s2243_s21  ;;  %v900_v41 = vrot.slane %v898_v15, 5  ;;  %v910_v1 = vrot.slane %v908_v16, 5  ;;  %v812_v4 = vshll.u32 %v2653_v33, 16  ;;  %v915_v38 = vrot.slane %v913_v59, 4 }
  0x59   : > { %1320 = vrot.lane.b32.xlu1 %v1946_v55, %s2244_s24  ;;  %v896_v2 = vrot.slane %v895_v26, 4  ;;  %v799_v14 = vor.u32 %v798_v0, %v795_v30  ;;  %v804_v18 = vrot.slane %v802_v31, 5  ;;  %v918_v7 = vrot.slane %v916_v63, 5  ;;  %v2127_v63 = vld [vmem:[%s3306_s1 + $0x8] sm:$0xff]  }
  0x5a   : > { %v905_v39 = vor.u32 %v904_v34, %v900_v41  ;;  %v814_v3 = vrot.slane %v812_v4, 5  ;;  %v922_v32 = vshll.u32 %v2623_v56, 16  ;;  %v928_v44 = vrot.slane %v926_v5, 4  ;;  %1997 = vmatprep.subr.bf16.mxu0 %v2127_v63  ;;  %v2698_v26 = vld [vmem:[%s2341_s6 + $0x48] sm:$0xf]  ;;  %2018 = vmatprep.subr.bf16.mxu1 %v2127_v63 }
  0x5b   : > { %v901_v23 = vsel %vm2474_vm5, %v896_v2, %v900_v41  ;;  %v800_v12 = vrot.slane %v799_v14, 4  ;;  %v809_v24 = vor.u32 %v808_v36, %v804_v18  ;;  %v919_v42 = vor.u32 %v918_v7, %v915_v38  ;;  %v2701_v0 = vld [vmem:[%s2341_s6 + $0x4c] sm:$0xf]  ;;  %1998 = vmatpush3.bf16.msra.mxu0 %v2127_v63  ;;  %2021 = vmatpush3.bf16.msra.mxu1 %v2127_v63  ;;  %v2712_v4 = vld [vmem:[%s2341_s6 + $0x50] sm:$0x1] }
  0x5c   : > { %1312 = vrot.lane.b32.xlu0 %v1942_v25, %s2244_s24  ;;  %v906_v17 = vrot.slane %v905_v39, 4  ;;  %v924_v9 = vrot.slane %v922_v32, 5  ;;  %v932_v48 = vshll.u32 %v2662_v51, 16  ;;  %v819_v22 = vrot.slane %v817_v28, 4 }
  0x5d   : > { %1322 = vrot.lane.b32.xlu1 %v1947_v6, %s2244_s24  ;;  %v805_v52 = vsel %vm2474_vm5, %v800_v12, %v804_v18  ;;  %v810_v53 = vrot.slane %v809_v24, 4  ;;  %v920_v47 = vrot.slane %v919_v42, 4  ;;  %v822_v54 = vrot.slane %v820_v40, 5  ;;  %v2728_v24 = vld [vmem:[%s2341_s6 + $0x1c] sm:$0xf] }
  0x5e   : > { %v911_v55 = vsel %vm2474_vm5, %v906_v17, %v910_v1  ;;  %v929_v19 = vor.u32 %v928_v44, %v924_v9  ;;  %v934_v58 = vrot.slane %v932_v48, 5  ;;  %v826_v21 = vshll.u32 %v2633_v50, 16 }
  0x5f   : > { %v1954_v49 = vcombine.low %v901_v23, %v911_v55  ;;  %v815_v37 = vsel %vm2474_vm5, %v810_v53, %v814_v3  ;;  %v925_v25 = vsel %vm2474_vm5, %v920_v47, %v924_v9  ;;  %v823_v59 = vor.u32 %v822_v54, %v819_v22  ;;  %v2725_v3 = vld [vmem:[%s2341_s6 + $0x18] sm:$0xf]  ;;  %v2734_v22 = vld [vmem:[%s2341_s6 + $0x20] sm:$0x1] }
  0x60   : > { %1314 = vrot.lane.b32.xlu0 %v1943_v29, %s2244_s24  ;;  %v1950_v5 = vcombine.low %v805_v52, %v815_v37  ;;  %v930_v6 = vrot.slane %v929_v19, 4  ;;  %v828_v28 = vrot.slane %v826_v21, 5  ;;  %v832_v40 = vrot.slane %v830_v8, 4 }
  0x61   : > { %1360 = vrot.lane.b32.xlu1 %v1954_v49, %s2245_s30  ;;  %v824_v10 = vrot.slane %v823_v59, 4  ;;  %v836_v11 = vshll.u32 %v2678_v20, 16  ;;  %v1890_v15 = vrot.slane %v2589_v43, 9  ;;  %v1038_v34 = vrot.slane %v2596_v62, 5 }
  0x62   : > { %v935_v29 = vsel %vm2474_vm5, %v930_v6, %v934_v58  ;;  %v833_v16 = vor.u32 %v832_v40, %v828_v28  ;;  %v1041_v30 = vrot.slane %v2640_v60, 5  ;;  %v1886_v8 = vrot.slane %v2599_v46, 9 }
  0x63   : > { %v1955_v31 = vcombine.low %v925_v25, %v935_v29  ;;  %v829_v43 = vsel %vm2474_vm5, %v824_v10, %v828_v28  ;;  %v838_v62 = vrot.slane %v836_v11, 5  ;;  %v1039_v36 = vsel %vm2415_vm2, %v1890_v15, %v1038_v34  ;;  %v2749_v15 = vld [vmem:[%s2341_s6 + $0x54] sm:$0xf] }
  0x64   : > { %1352 = vrot.lane.b32.xlu0 %v1950_v5, %s2245_s30  ;;  %v834_v60 = vrot.slane %v833_v16, 4  ;;  %v1040_v46 = vrot.slane %v1038_v34, 4  ;;  %v1010_v41 = vrot.slane %v2605_v13, 5  ;;  %v1013_v1 = vrot.slane %v2653_v33, 5 }
  0x65   : > { %1362 = vrot.lane.b32.xlu1 %v1955_v31, %s2245_s30  ;;  %v334_v38 = vshrl.u32 %v2698_v26, 16  ;;  %v337_v2 = vshll.u32 %v2698_v26, 16  ;;  %v343_v14 = vshll.u32 %v2701_v0, 16  ;;  %v347_v18 = vshrl.u32 %v2701_v0, 16 }
  0x66   : > { %v839_v13 = vsel %vm2474_vm5, %v834_v60, %v838_v62  ;;  %v1042_v33 = vsel %vm2415_vm2, %v1040_v46, %v1041_v30  ;;  %v1011_v7 = vsel %vm2415_vm2, %v1886_v8, %v1010_v41  ;;  %v1012_v39 = vrot.slane %v1010_v41, 4  ;;  %v2756_v30 = vld [vmem:[%s2341_s6 + $0x58] sm:$0xf]  ;;  %v2769_v41 = vld [vmem:[%s2341_s6 + $0x5c] sm:$0x1] }
  0x67   : > { %v1951_v32 = vcombine.low %v829_v43, %v839_v13  ;;  %v1962_v44 = vcombine.low %v1039_v36, %v1042_v33  ;;  %v336_v23 = vrot.slane %v334_v38, 4  ;;  %v339_v12 = vrot.slane %v337_v2, 5  ;;  %v2781_v13 = vld [vmem:[%s2341_s6 + $0x28] sm:$0xf] }
  0x68   : > { %v1014_v42 = vsel %vm2415_vm2, %v1012_v39, %v1013_v1  ;;  %v345_v17 = vrot.slane %v343_v14, 5  ;;  %v349_v9 = vrot.slane %v347_v18, 4  ;;  %v353_v48 = vshll.u32 %v2712_v4, 16 }
  0x69   : > { %1354 = vrot.lane.b32.xlu0 %v1951_v32, %s2245_s30  ;;  %1400 = vrot.lane.b32.xlu1 %v1962_v44, %s2246_s3  ;;  %v1958_v27 = vcombine.low %v1011_v7, %v1014_v42  ;;  %v340_v52 = vor.u32 %v339_v12, %v336_v23  ;;  %v238_v53 = vshrl.u32 %v2725_v3, 16  ;;  %v241_v47 = vshll.u32 %v2725_v3, 16  ;;  %v2788_v42 = vld [vmem:[%s2341_s6 + $0x2c] sm:$0x1] }
  0x6a   : > { %v350_v54 = vor.u32 %v349_v9, %v345_v17  ;;  %v355_v55 = vrot.slane %v353_v48, 5  ;;  %v247_v19 = vshll.u32 %v2728_v24, 16  ;;  %v251_v58 = vshrl.u32 %v2728_v24, 16 }
  0x6b   : > { %v341_v21 = vrot.slane %v340_v52, 4  ;;  %v240_v49 = vrot.slane %v238_v53, 4  ;;  %v243_v37 = vrot.slane %v241_v47, 5  ;;  %v257_v25 = vshll.u32 %v2734_v22, 16 }
  0x6c   : > { %v351_v59 = vrot.slane %v350_v54, 4  ;;  %v249_v63 = vrot.slane %v247_v19, 5  ;;  %v253_v5 = vrot.slane %v251_v58, 4  ;;  %v1891_v6 = vrot.slane %v2613_v45, 9 }
  0x6d   : > { %1392 = vrot.lane.b32.xlu0 %v1958_v27, %s2246_s3  ;;  %v346_v28 = vsel %vm2474_vm5, %v341_v21, %v345_v17  ;;  %v244_v40 = vor.u32 %v243_v37, %v240_v49  ;;  %v259_v10 = vrot.slane %v257_v25, 5  ;;  %v1045_v11 = vrot.slane %v2623_v56, 5 }
  0x6e   : > { %v356_v34 = vsel %vm2474_vm5, %v351_v59, %v355_v55  ;;  %v254_v29 = vor.u32 %v253_v5, %v249_v63  ;;  %v1048_v16 = vrot.slane %v2662_v51, 5  ;;  %v1887_v45 = vrot.slane %v2626_v57, 9 }
  0x6f   : > { %v1908_v8 = vcombine.low %v346_v28, %v356_v34  ;;  %v245_v31 = vrot.slane %v244_v40, 4  ;;  %v1046_v43 = vsel %vm2415_vm2, %v1891_v6, %v1045_v11  ;;  %v1047_v56 = vrot.slane %v1045_v11, 4 }
  0x70   : > { %v255_v62 = vrot.slane %v254_v29, 4  ;;  %v1017_v36 = vrot.slane %v2633_v50, 5  ;;  %v1020_v60 = vrot.slane %v2678_v20, 5  ;;  %v358_v46 = vshrl.u32 %v2749_v15, 16  ;;  %v2774_v50 = vld [vmem:[%s2341_s6 + $0x24] sm:$0xf] }
  0x71   : > { %1124 = vrot.lane.b32.xlu1 %v1908_v8, %s2241_s17  ;;  %v250_v57 = vsel %vm2474_vm5, %v245_v31, %v249_v63  ;;  %v1049_v51 = vsel %vm2415_vm2, %v1047_v56, %v1048_v16  ;;  %v361_v1 = vshll.u32 %v2749_v15, 16  ;;  %v367_v38 = vshll.u32 %v2756_v30, 16 }
  0x72   : > { %v260_v20 = vsel %vm2474_vm5, %v255_v62, %v259_v10  ;;  %v1963_v2 = vcombine.low %v1046_v43, %v1049_v51  ;;  %v1018_v14 = vsel %vm2415_vm2, %v1887_v45, %v1017_v36  ;;  %v1019_v18 = vrot.slane %v1017_v36, 4 }
  0x73   : > { %v1904_v33 = vcombine.low %v250_v57, %v260_v20  ;;  %v360_v7 = vrot.slane %v358_v46, 4  ;;  %v363_v39 = vrot.slane %v361_v1, 5  ;;  %v369_v32 = vrot.slane %v367_v38, 5  ;;  %v2818_v46 = vld [vmem:[%s2341_s6 + $0x54] sm:$0xf] }
  0x74   : > { %v1021_v44 = vsel %vm2415_vm2, %v1019_v18, %v1020_v60  ;;  %v371_v23 = vshrl.u32 %v2756_v30, 16  ;;  %v377_v12 = vshll.u32 %v2769_v41, 16  ;;  %v262_v17 = vshrl.u32 %v2774_v50, 16  ;;  %v2825_v38 = vld [vmem:[%s2341_s6 + $0x58] sm:$0xf] }
  0x75   : > { %1116 = vrot.lane.b32.xlu0 %v1904_v33, %s2241_s17  ;;  %1402 = vrot.lane.b32.xlu1 %v1963_v2, %s2246_s3  ;;  %v1959_v9 = vcombine.low %v1018_v14, %v1021_v44  ;;  %v364_v48 = vor.u32 %v363_v39, %v360_v7  ;;  %v265_v27 = vshll.u32 %v2774_v50, 16  ;;  %v271_v52 = vshll.u32 %v2781_v13, 16  ;;  %v2832_v33 = vld [vmem:[%s2341_s6 + $0x24] sm:$0xf]  ;;  %v2840_v44 = vld [vmem:[%s2341_s6 + $0x28] sm:$0xf] }
  0x76   : > { %v373_v53 = vrot.slane %v371_v23, 4  ;;  %v379_v47 = vrot.slane %v377_v12, 5  ;;  %v264_v54 = vrot.slane %v262_v17, 4  ;;  %v275_v55 = vshrl.u32 %v2781_v13, 16 }
  0x77   : > { %v365_v19 = vrot.slane %v364_v48, 4  ;;  %v267_v58 = vrot.slane %v265_v27, 5  ;;  %v273_v21 = vrot.slane %v271_v52, 5  ;;  %v281_v49 = vshll.u32 %v2788_v42, 16 }
  0x78   : > { %v374_v37 = vor.u32 %v373_v53, %v369_v32  ;;  %v277_v25 = vrot.slane %v275_v55, 4  ;;  %v1824_v59 = vrot.slane %v2698_v26, 9  ;;  %v452_v63 = vrot.slane %v2701_v0, 5 }
  0x79   : > { %1394 = vrot.lane.b32.xlu0 %v1959_v9, %s2246_s3  ;;  %v370_v5 = vsel %vm2474_vm5, %v365_v19, %v369_v32  ;;  %v268_v6 = vor.u32 %v267_v58, %v264_v54  ;;  %v283_v28 = vrot.slane %v281_v49, 5  ;;  %v455_v40 = vrot.slane %v2712_v4, 5  ;;  %v2847_v9 = vld [vmem:[%s2341_s6 + $0x60] sm:$0xf]  ;;  %v2859_v54 = vld [vmem:[%s2341_s6 + $0x30] sm:$0xf] }
  0x7a   : > { %v375_v10 = vrot.slane %v374_v37, 4  ;;  %v278_v11 = vor.u32 %v277_v25, %v273_v21  ;;  %v453_v34 = vsel %vm2415_vm2, %v1824_v59, %v452_v63  ;;  %v454_v29 = vrot.slane %v452_v63, 4  ;;  %v2867_v49 = vld [vmem:[%s2341_s6 + $0x34] sm:$0xf] }
  0x7b   : > { %v269_v16 = vrot.slane %v268_v6, 4  ;;  %v1820_v26 = vrot.slane %v2725_v3, 9  ;;  %v424_v0 = vrot.slane %v2728_v24, 5  ;;  %v427_v45 = vrot.slane %v2734_v22, 5 }
  0x7c   : > { %v380_v8 = vsel %vm2474_vm5, %v375_v10, %v379_v47  ;;  %v279_v31 = vrot.slane %v278_v11, 4  ;;  %v456_v4 = vsel %vm2415_vm2, %v454_v29, %v455_v40  ;;  %v1825_v43 = vrot.slane %v2749_v15, 9  ;;  %v2856_v47 = vld [vmem:[%s2341_s6 + $0x64] sm:$0xf] }
  0x7d   : > { %v1909_v56 = vcombine.low %v370_v5, %v380_v8  ;;  %v274_v62 = vsel %vm2474_vm5, %v269_v16, %v273_v21  ;;  %v1916_v36 = vcombine.low %v453_v34, %v456_v4  ;;  %v425_v60 = vsel %vm2415_vm2, %v1820_v26, %v424_v0  ;;  %v2874_v5 = vld [vmem:[%s2341_s6 + $0x5c] sm:$0x1]  ;;  %v2886_v26 = vld [vmem:[%s2341_s6 + $0x2c] sm:$0x1] }
  0x7e   : > { %v284_v22 = vsel %vm2474_vm5, %v279_v31, %v283_v28  ;;  %v426_v57 = vrot.slane %v424_v0, 4  ;;  %v459_v51 = vrot.slane %v2756_v30, 5  ;;  %v462_v1 = vrot.slane %v2769_v41, 5 }
  0x7f   : > { %1126 = vrot.lane.b32.xlu1 %v1909_v56, %s2241_s17  ;;  %v1905_v20 = vcombine.low %v274_v62, %v284_v22  ;;  %v1821_v2 = vrot.slane %v2774_v50, 9  ;;  %v431_v14 = vrot.slane %v2781_v13, 5  ;;  %v434_v18 = vrot.slane %v2788_v42, 5 }
  0x80   : > { %v428_v7 = vsel %vm2415_vm2, %v426_v57, %v427_v45  ;;  %v460_v41 = vsel %vm2415_vm2, %v1825_v43, %v459_v51  ;;  %v461_v39 = vrot.slane %v459_v51, 4  ;;  %v637_v32 = vshrl.u32 %v2818_v46, 16 }
  0x81   : > { %1118 = vrot.lane.b32.xlu0 %v1905_v20, %s2241_s17  ;;  %v1912_v23 = vcombine.low %v425_v60, %v428_v7  ;;  %v432_v12 = vsel %vm2415_vm2, %v1821_v2, %v431_v14  ;;  %v433_v42 = vrot.slane %v431_v14, 4  ;;  %v640_v17 = vshll.u32 %v2818_v46, 16  ;;  %v2895_v2 = vld [vmem:[%s2341_s6 + $0x68] sm:$0x1] }
  0x82   : > { %v463_v48 = vsel %vm2415_vm2, %v461_v39, %v462_v1  ;;  %v650_v27 = vshrl.u32 %v2825_v38, 16  ;;  %v1924_v52 = vcombine.low %v2818_v46, %v2825_v38  ;;  %v541_v53 = vshrl.u32 %v2832_v33, 16 }
  0x83   : > { %1164 = vrot.lane.b32.xlu1 %v1916_v36, %s2240_s8  ;;  %v1917_v55 = vcombine.low %v460_v41, %v463_v48  ;;  %v435_v19 = vsel %vm2415_vm2, %v433_v42, %v434_v18  ;;  %v544_v58 = vshll.u32 %v2832_v33, 16  ;;  %v554_v21 = vshrl.u32 %v2840_v44, 16 }
  0x84   : > { %v1913_v37 = vcombine.low %v432_v12, %v435_v19  ;;  %v1920_v25 = vcombine.low %v2832_v33, %v2840_v44  ;;  %v661_v59 = vshrl.u32 %v2847_v9, 16  ;;  %v664_v63 = vshll.u32 %v2847_v9, 16 }
  0x85   : > { %1156 = vrot.lane.b32.xlu0 %v1912_v23, %s2240_s8  ;;  %v674_v6 = vshrl.u32 %v2856_v47, 16  ;;  %v1925_v28 = vcombine.low %v2847_v9, %v2856_v47  ;;  %v565_v40 = vshrl.u32 %v2859_v54, 16  ;;  %v568_v10 = vshll.u32 %v2859_v54, 16 }
  0x86   : > { %v578_v11 = vshrl.u32 %v2867_v49, 16  ;;  %v1921_v34 = vcombine.low %v2859_v54, %v2867_v49  ;;  %v639_v29 = vrot.slane %v637_v32, 4  ;;  %v642_v16 = vrot.slane %v640_v17, 5 }
  0x87   : > { %1166 = vrot.lane.b32.xlu1 %v1917_v55, %s2240_s8  ;;  %v646_v0 = vshll.u32 %v2825_v38, 16  ;;  %v652_v45 = vrot.slane %v650_v27, 4  ;;  %v656_v8 = vshll.u32 %v2874_v5, 16  ;;  %v543_v31 = vrot.slane %v541_v53, 4 }
  0x88   : > { %v643_v4 = vor.u32 %v642_v16, %v639_v29  ;;  %v546_v43 = vrot.slane %v544_v58, 5  ;;  %v550_v56 = vshll.u32 %v2840_v44, 16  ;;  %v556_v62 = vrot.slane %v554_v21, 4 }
  0x89   : > { %1158 = vrot.lane.b32.xlu0 %v1913_v37, %s2240_s8  ;;  %v648_v36 = vrot.slane %v646_v0, 5  ;;  %v658_v60 = vrot.slane %v656_v8, 5  ;;  %v560_v22 = vshll.u32 %v2886_v26, 16  ;;  %v663_v57 = vrot.slane %v661_v59, 4 }
  0x8a   : > { %v644_v51 = vrot.slane %v643_v4, 4  ;;  %v547_v1 = vor.u32 %v546_v43, %v543_v31  ;;  %v552_v20 = vrot.slane %v550_v56, 5  ;;  %v666_v14 = vrot.slane %v664_v63, 5  ;;  %v2909_v63 = vld [vmem:[%s2341_s6 + $0x38] sm:$0x1] }
  0x8b   : > { %1204 = vrot.lane.b32.xlu1 %v1924_v52, %s2239_s7  ;;  %v653_v18 = vor.u32 %v652_v45, %v648_v36  ;;  %v562_v7 = vrot.slane %v560_v22, 5  ;;  %v670_v41 = vshll.u32 %v2856_v47, 16  ;;  %v676_v39 = vrot.slane %v674_v6, 4 }
  0x8c   : > { %v649_v32 = vsel %vm2474_vm5, %v644_v51, %v648_v36  ;;  %v548_v23 = vrot.slane %v547_v1, 4  ;;  %v557_v12 = vor.u32 %v556_v62, %v552_v20  ;;  %v667_v42 = vor.u32 %v666_v14, %v663_v57 }
  0x8d   : > { %1196 = vrot.lane.b32.xlu0 %v1920_v25, %s2239_s7  ;;  %v654_v17 = vrot.slane %v653_v18, 4  ;;  %v672_v48 = vrot.slane %v670_v41, 5  ;;  %v680_v27 = vshll.u32 %v2895_v2, 16  ;;  %v567_v53 = vrot.slane %v565_v40, 4  ;;  %v2937_v18 = vld [vmem:[%s2341_s6 + $0x60] sm:$0xf] }
  0x8e   : > { %v553_v52 = vsel %vm2474_vm5, %v548_v23, %v552_v20  ;;  %v558_v55 = vrot.slane %v557_v12, 4  ;;  %v668_v19 = vrot.slane %v667_v42, 4  ;;  %v570_v58 = vrot.slane %v568_v10, 5  ;;  %v2954_v23 = vld [vmem:[%s2341_s6 + $0x30] sm:$0xf] }
  0x8f   : > { %1206 = vrot.lane.b32.xlu1 %v1925_v28, %s2239_s7  ;;  %v659_v21 = vsel %vm2474_vm5, %v654_v17, %v658_v60  ;;  %v677_v37 = vor.u32 %v676_v39, %v672_v48  ;;  %v682_v59 = vrot.slane %v680_v27, 5  ;;  %v574_v25 = vshll.u32 %v2867_v49, 16 }
  0x90   : > { %v1932_v6 = vcombine.low %v649_v32, %v659_v21  ;;  %v563_v40 = vsel %vm2474_vm5, %v558_v55, %v562_v7  ;;  %v673_v29 = vsel %vm2474_vm5, %v668_v19, %v672_v48  ;;  %v571_v16 = vor.u32 %v570_v58, %v567_v53  ;;  %v2964_v53 = vld [vmem:[%s2341_s6 + $0x34] sm:$0xf]  ;;  %v2972_v21 = vld [vmem:[%s2341_s6 + $0x6c] sm:$0xf] }
  0x91   : > { %1198 = vrot.lane.b32.xlu0 %v1921_v34, %s2239_s7  ;;  %v1928_v28 = vcombine.low %v553_v52, %v563_v40  ;;  %v678_v10 = vrot.slane %v677_v37, 4  ;;  %v576_v0 = vrot.slane %v574_v25, 5  ;;  %v580_v45 = vrot.slane %v578_v11, 4 }
  0x92   : > { %v572_v8 = vrot.slane %v571_v16, 4  ;;  %v584_v31 = vshll.u32 %v2909_v63, 16  ;;  %v1858_v4 = vrot.slane %v2818_v46, 9  ;;  %v752_v43 = vrot.slane %v2825_v38, 5 }
  0x93   : > { %1244 = vrot.lane.b32.xlu1 %v1932_v6, %s2242_s18  ;;  %v683_v56 = vsel %vm2474_vm5, %v678_v10, %v682_v59  ;;  %v581_v62 = vor.u32 %v580_v45, %v576_v0  ;;  %v755_v34 = vrot.slane %v2874_v5, 5  ;;  %v1854_v36 = vrot.slane %v2832_v33, 9  ;;  %v2939_v7 = vpop.permute.xlu1 %1200  ;;  %v2983_v6 = vld [vmem:[%s2341_s6 + $0x3c] sm:$0xf]  ;;  %v2991_v10 = vld [vmem:[%s2341_s6 + $0x40] sm:$0xf] }
  0x94   : > { %v1933_v60 = vcombine.low %v673_v29, %v683_v56  ;;  %v577_v11 = vsel %vm2474_vm5, %v572_v8, %v576_v0  ;;  %v586_v22 = vrot.slane %v584_v31, 5  ;;  %v753_v46 = vsel %vm2415_vm2, %v1858_v4, %v752_v43  ;;  %v2956_v12 = vpop.permute.xlu0 %1192 }
  0x95   : > { %1236 = vrot.lane.b32.xlu0 %v1928_v28, %s2242_s18  ;;  %v582_v38 = vrot.slane %v581_v62, 4  ;;  %v754_v57 = vrot.slane %v752_v43, 4  ;;  %v724_v51 = vrot.slane %v2840_v44, 5  ;;  %v727_v1 = vrot.slane %v2886_v26, 5  ;;  %v3001_v43 = vld [vmem:[%s2341_s6 + $0x68] sm:$0x1] }
  0x96   : > { %v1859_v5 = vrot.slane %v2847_v9, 9  ;;  %v759_v33 = vrot.slane %v2856_v47, 5  ;;  %v762_v20 = vrot.slane %v2895_v2, 5  ;;  %v1855_v14 = vrot.slane %v2859_v54, 9  ;;  %v2949_v2 = vld [vmem:[%s2341_s6 + $0x64] sm:$0xf] }
  0x97   : > { %1246 = vrot.lane.b32.xlu1 %v1933_v60, %s2242_s18  ;;  %v587_v44 = vsel %vm2474_vm5, %v582_v38, %v586_v22  ;;  %v756_v9 = vsel %vm2415_vm2, %v754_v57, %v755_v34  ;;  %v725_v47 = vsel %vm2415_vm2, %v1854_v36, %v724_v51  ;;  %v726_v26 = vrot.slane %v724_v51, 4  ;;  %v2993_v0 = vpop.permute.xlu1 %1202  ;;  %v3015_v57 = vld [vmem:[%s2341_s6 + $0x38] sm:$0x1] }
  0x98   : > { %v1929_v54 = vcombine.low %v577_v11, %v587_v44  ;;  %v1940_v41 = vcombine.low %v753_v46, %v756_v9  ;;  %v760_v39 = vsel %vm2415_vm2, %v1859_v5, %v759_v33  ;;  %v761_v32 = vrot.slane %v759_v33, 4  ;;  %v3008_v60 = vpop.permute.xlu0 %1194 }
  0x99   : > { %v728_v42 = vsel %vm2415_vm2, %v726_v26, %v727_v1  ;;  %v731_v17 = vrot.slane %v2867_v49, 5  ;;  %v734_v48 = vrot.slane %v2909_v63, 5  ;;  %v937_v27 = vshrl.u32 %v2937_v18, 16  ;;  %v2975_v49 = vld [vmem:[%s2341_s6 + $0x70] sm:$0xf] }
  0x9a   : > { %1238 = vrot.lane.b32.xlu0 %v1929_v54, %s2242_s18  ;;  %v1936_v52 = vcombine.low %v725_v47, %v728_v42  ;;  %v763_v55 = vsel %vm2415_vm2, %v761_v32, %v762_v20  ;;  %v940_v19 = vshll.u32 %v2937_v18, 16  ;;  %v950_v58 = vshrl.u32 %v2949_v2, 16  ;;  %s1978_s18 = sshll.u32 %s2221_s12, 4 }
  0x9b   : > { %1284 = vrot.lane.b32.xlu1 %v1940_v41, %s2243_s21  ;;  %v1941_v37 = vcombine.low %v760_v39, %v763_v55  ;;  %v732_v59 = vsel %vm2415_vm2, %v1855_v14, %v731_v17  ;;  %v733_v63 = vrot.slane %v731_v17, 4  ;;  %v1948_v25 = vcombine.low %v2937_v18, %v2949_v2 }
  0x9c   : > { %v841_v40 = vshrl.u32 %v2954_v23, 16  ;;  %v844_v29 = vshll.u32 %v2954_v23, 16  ;;  %v854_v16 = vshrl.u32 %v2964_v53, 16  ;;  %v1944_v28 = vcombine.low %v2954_v23, %v2964_v53 }
  0x9d   : > { %v735_v45 = vsel %vm2415_vm2, %v733_v63, %v734_v48  ;;  %v961_v8 = vshrl.u32 %v2972_v21, 16  ;;  %v964_v31 = vshll.u32 %v2972_v21, 16  ;;  %v974_v4 = vshrl.u32 %v2975_v49, 16  ;;  %v3026_v48 = vld [vmem:[%s2341_s6 + $0x74] sm:$0x1] }
  0x9e   : > { %1276 = vrot.lane.b32.xlu0 %v1936_v52, %s2243_s21  ;;  %v1937_v56 = vcombine.low %v732_v59, %v735_v45  ;;  %v1949_v62 = vcombine.low %v2972_v21, %v2975_v49  ;;  %v865_v34 = vshrl.u32 %v2983_v6, 16  ;;  %v868_v36 = vshll.u32 %v2983_v6, 16 }
  0x9f   : > { %1286 = vrot.lane.b32.xlu1 %v1941_v37, %s2243_s21  ;;  %v878_v11 = vshrl.u32 %v2991_v10, 16  ;;  %v1945_v22 = vcombine.low %v2983_v6, %v2991_v10  ;;  %v939_v46 = vrot.slane %v937_v27, 4  ;;  %v942_v38 = vrot.slane %v940_v19, 5  ;;  %v3022_v39 = vpop.permute.xlu1 %1160 }
  0xa0   : > { %v946_v51 = vshll.u32 %v2949_v2, 16  ;;  %v952_v1 = vrot.slane %v950_v58, 4  ;;  %v956_v5 = vshll.u32 %v3001_v43, 16  ;;  %v843_v33 = vrot.slane %v841_v40, 4  ;;  %v3029_v37 = vpop.permute.xlu0 %1152 }
  0xa1   : > { %v943_v20 = vor.u32 %v942_v38, %v939_v46  ;;  %v846_v14 = vrot.slane %v844_v29, 5  ;;  %v850_v44 = vshll.u32 %v2964_v53, 16  ;;  %v856_v9 = vrot.slane %v854_v16, 4 }
  0xa2   : > { %1278 = vrot.lane.b32.xlu0 %v1937_v56, %s2243_s21  ;;  %v948_v47 = vrot.slane %v946_v51, 5  ;;  %v958_v26 = vrot.slane %v956_v5, 5  ;;  %v860_v54 = vshll.u32 %v3015_v57, 16  ;;  %v963_v41 = vrot.slane %v961_v8, 4  ;;  %v1873_v5 = vld [vmem:[%s2341_s6 + $0x44] sm:$0x1] }
  0xa3   : > { %1324 = vrot.lane.b32.xlu1 %v1948_v25, %s2244_s24  ;;  %v944_v32 = vrot.slane %v943_v20, 4  ;;  %v847_v42 = vor.u32 %v846_v14, %v843_v33  ;;  %v852_v17 = vrot.slane %v850_v44, 5  ;;  %v966_v27 = vrot.slane %v964_v31, 5  ;;  %v3042_v33 = vpop.permute.xlu1 %1162  ;;  %s1979_s21 = sshll.u32 %s2225_s13, 5 }
  0xa4   : > { %v953_v52 = vor.u32 %v952_v1, %v948_v47  ;;  %v862_v55 = vrot.slane %v860_v54, 5  ;;  %v970_v19 = vshll.u32 %v2975_v49, 16  ;;  %v976_v58 = vrot.slane %v974_v4, 4 }
  0xa5   : > { %v949_v59 = vsel %vm2474_vm5, %v944_v32, %v948_v47  ;;  %v848_v63 = vrot.slane %v847_v42, 4  ;;  %v857_v40 = vor.u32 %v856_v9, %v852_v17  ;;  %v967_v25 = vor.u32 %v966_v27, %v963_v41 }
  0xa6   : > { %1316 = vrot.lane.b32.xlu0 %v1944_v28, %s2244_s24  ;;  %v954_v29 = vrot.slane %v953_v52, 4  ;;  %v972_v16 = vrot.slane %v970_v19, 5  ;;  %v980_v45 = vshll.u32 %v3026_v48, 16  ;;  %v867_v8 = vrot.slane %v865_v34, 4 }
  0xa7   : > { %1326 = vrot.lane.b32.xlu1 %v1949_v62, %s2244_s24  ;;  %v853_v31 = vsel %vm2474_vm5, %v848_v63, %v852_v17  ;;  %v858_v4 = vrot.slane %v857_v40, 4  ;;  %v968_v56 = vrot.slane %v967_v25, 4  ;;  %v870_v46 = vrot.slane %v868_v36, 5 }
  0xa8   : > { %v959_v38 = vsel %vm2474_vm5, %v954_v29, %v958_v26  ;;  %v977_v51 = vor.u32 %v976_v58, %v972_v16  ;;  %v982_v1 = vrot.slane %v980_v45, 5  ;;  %v874_v28 = vshll.u32 %v2991_v10, 16  ;;  %v3049_v26 = vpop.permute.xlu0 %1154 }
  0xa9   : > { %v1956_v20 = vcombine.low %v949_v59, %v959_v38  ;;  %v863_v62 = vsel %vm2474_vm5, %v858_v4, %v862_v55  ;;  %v973_v34 = vsel %vm2474_vm5, %v968_v56, %v972_v16  ;;  %v871_v14 = vor.u32 %v870_v46, %v867_v8 }
  0xaa   : > { %1318 = vrot.lane.b32.xlu0 %v1945_v22, %s2244_s24  ;;  %v1952_v36 = vcombine.low %v853_v31, %v863_v62  ;;  %v978_v44 = vrot.slane %v977_v51, 4  ;;  %v876_v9 = vrot.slane %v874_v28, 5  ;;  %v880_v47 = vrot.slane %v878_v11, 4  ;;  %v3065_v40 = vpop.permute.xlu1 %1114  ;;  %v2130_v62 = vld [vmem:[%s3306_s1 + $0x10] ss:$0 sps:$4 sm:$0x33]   ;;  %s1719_s24 = sadd.s32 %s1979_s21, %s1978_s18 }
  0xab   : > { %1364 = vrot.lane.b32.xlu1 %v1956_v20, %s2245_s30  ;;  %v872_v54 = vrot.slane %v871_v14, 4  ;;  %v884_v41 = vshll.u32 %v1873_v5, 16  ;;  %v1892_v32 = vrot.slane %v2937_v18, 9  ;;  %v1052_v42 = vrot.slane %v2949_v2, 5  ;;  %2023 = vmatprep.subr.msk.bf16.mxu0 %vm1589_vm6, %v2130_v62  ;;  %s1980_s25 = sshll.u32 %s1719_s24, 7 }
  0xac   : > { %v983_v17 = vsel %vm2474_vm5, %v978_v44, %v982_v1  ;;  %v881_v27 = vor.u32 %v880_v47, %v876_v9  ;;  %v1055_v22 = vrot.slane %v3001_v43, 5  ;;  %v1888_v52 = vrot.slane %v2954_v23, 9  ;;  %2024 = vmatprep.subr.msk.bf16.mxu1 %vm1589_vm6, %v2130_v62  ;;  %s3240_s28 = scalar_lea.hbm %s3307_s2, %s1980_s25 }
  0xad   : > { %v1957_v55 = vcombine.low %v973_v34, %v983_v17  ;;  %v877_v11 = vsel %vm2474_vm5, %v872_v54, %v876_v9  ;;  %v886_v19 = vrot.slane %v884_v41, 5  ;;  %v1053_v58 = vsel %vm2415_vm2, %v1892_v32, %v1052_v42  ;;  %v2133_v32 = vld [vmem:[%s2341_s6 + $0x30] sm:$0xf] }
  0xae   : > { %1356 = vrot.lane.b32.xlu0 %v1952_v36, %s2245_s30  ;;  %v882_v18 = vrot.slane %v881_v27, 4  ;;  %v1054_v2 = vrot.slane %v1052_v42, 4  ;;  %v1024_v59 = vrot.slane %v2964_v53, 5  ;;  %v1027_v63 = vrot.slane %v3015_v57, 5  ;;  %v2134_v42 = vld [vmem:[%s2341_s6 + $0x34] sm:$0xf] }
  0xaf   : > { %1366 = vrot.lane.b32.xlu1 %v1957_v55, %s2245_s30  ;;  %v1893_v23 = vrot.slane %v2972_v21, 9  ;;  %v1059_v43 = vrot.slane %v2975_v49, 5  ;;  %v1062_v25 = vrot.slane %v3026_v48, 5  ;;  %v1889_v29 = vrot.slane %v2983_v6, 9  ;;  %v1113_v8 = vpop.permute.xlu0 %1112 }
  0xb0   : > { %v887_v16 = vsel %vm2474_vm5, %v882_v18, %v886_v19  ;;  %v1056_v53 = vsel %vm2415_vm2, %v1054_v2, %v1055_v22  ;;  %v1025_v57 = vsel %vm2415_vm2, %v1888_v52, %v1024_v59  ;;  %v1026_v45 = vrot.slane %v1024_v59, 4  ;;  %v2136_v19 = vld [vmem:[%s2341_s6 + $0x4] sm:$0xf] }
  0xb1   : > { %v1953_v31 = vcombine.low %v877_v11, %v887_v16  ;;  %v1964_v4 = vcombine.low %v1053_v58, %v1056_v53  ;;  %v1060_v21 = vsel %vm2415_vm2, %v1893_v23, %v1059_v43  ;;  %v1061_v49 = vrot.slane %v1059_v43, 4  ;;  %v2135_v11 = vld [vmem:[%s2341_s6] sm:$0xf] }
  0xb2   : > { %v1028_v6 = vsel %vm2415_vm2, %v1026_v45, %v1027_v63  ;;  %v1031_v61 = vrot.slane %v2991_v10, 5  ;;  %v1034_v48 = vrot.slane %v1873_v5, 5  ;;  %v1591_v35 = vsel %vm1589_vm6, %v2130_v62, 0  ;;  %v2138_v53 = vld [vmem:[%s2341_s6 + $0x40] sm:$0xf] }
  0xb3   : > { %1358 = vrot.lane.b32.xlu0 %v1953_v31, %s2245_s30  ;;  %1404 = vrot.lane.b32.xlu1 %v1964_v4, %s2246_s3  ;;  %v1960_v56 = vcombine.low %v1025_v57, %v1028_v6  ;;  %v1063_v46 = vsel %vm2415_vm2, %v1061_v49, %v1062_v25  ;;  %v1898_v17 = vcombine.low %v2133_v32, %v2134_v42  ;;  %v2139_v6 = vld [vmem:[%s2341_s6 + $0xc] sm:$0xf] }
  0xb4   : > { %v1965_v38 = vcombine.low %v1060_v21, %v1063_v46  ;;  %v1032_v51 = vsel %vm2415_vm2, %v1889_v29, %v1031_v61  ;;  %v1033_v1 = vrot.slane %v1031_v61, 4  ;;  %v3089_v28 = vpop.permute.xlu1 %1122  ;;  %2000 = vmatpush3.bf16.msra.mxu0 %v1591_v35  ;;  %2022 = vmatpush3.bf16.msra.mxu1 %v1591_v35  ;;  %v1894_v58 = vcombine.low %v2135_v11, %v2136_v19  ;;  %v2140_v61 = vld [vmem:[%s2341_s6 + $0x10] sm:$0xf] }
  0xb6   : > { %v1035_v20 = vsel %vm2415_vm2, %v1033_v1, %v1034_v48  ;;  %v1121_v10 = vpop.permute.xlu0 %1120  ;;  %v1411_v63 = vsel %vm1408_vm7, %v1894_v58, %v1113_v8  ;;  %v1895_v48 = vcombine.low %v2139_v6, %v2140_v61 }
  0xb7   : > { %1396 = vrot.lane.b32.xlu0 %v1960_v56, %s2246_s3  ;;  %1406 = vrot.lane.b32.xlu1 %v1965_v38, %s2246_s3  ;;  %v1961_v5 = vcombine.low %v1032_v51, %v1035_v20  ;;  %v1423_v52 = vsel %vm1408_vm7, %v1898_v17, %v1121_v10  ;;  %v1435_v29 = vsel %vm1433_vm8, %v1411_v63, %v3029_v37 }
  0xb8   : > { %v1241_v34 = vpop.permute.xlu1 %1240  ;;  %v1443_v18 = vsel %vm1433_vm8, %v1423_v52, %v3022_v39  ;;  %v2137_v39 = vld [vmem:[%s2341_s6 + $0x3c] sm:$0xf]  ;;  %v1452_v8 = vsel %vm1450_vm9, %v1435_v29, %v2956_v12  ;;  %v1414_v10 = vsel %vm1408_vm7, %v1895_v48, %v3065_v40 }
  0xb9   : > { %v1460_v23 = vsel %vm1450_vm9, %v1443_v18, %v2939_v7  ;;  %v1899_v57 = vcombine.low %v2137_v39, %v2138_v53  ;;  %v1437_v62 = vsel %vm1433_vm8, %v1414_v10, %v3049_v26 }
  0xba   : > { %v1233_v14 = vpop.permute.xlu0 %1232  ;;  %v1477_v16 = vsel %vm1467_vm10, %v1460_v23, %v1241_v34  ;;  %v1454_v35 = vsel %vm1450_vm9, %v1437_v62, %v3008_v60 }
  0xbb   : > { %1398 = vrot.lane.b32.xlu0 %v1961_v5, %s2246_s3  ;;  %v1469_v21 = vsel %vm1467_vm10, %v1452_v8, %v1233_v14  ;;  %v1426_v56 = vsel %vm1408_vm7, %v1899_v57, %v3089_v28  ;;  %v2141_v57 = vld [vmem:[%s2341_s6 + $0x48] sm:$0xf]  ;;  %s2247_s3 = smov [#allocation2]  }
  0xbc   : > { %v1445_v1 = vsel %vm1433_vm8, %v1426_v56, %v3042_v33  ;;  %s2147_s4 = sshll.u32 %s2247_s3, 4  ;;  %s2148_s4 = int_to_ptr.vmem [resolvable:$false] %s2147_s4 }
  0xbd   : > { %v1462_v28 = vsel %vm1450_vm9, %v1445_v1, %v2993_v0  ;;  %s2149_s5 = scalar_lea.vmem %s2148_s4, 4096 }
  0xbf   : > { %v1243_v36 = vpop.permute.xlu1 %1242 }
  0xc0   : > { %v1479_v34 = vsel %vm1467_vm10, %v1462_v28, %v1243_v36 }
  0xc2   : > { %v3099_v44 = vpop.permute.xlu0 %1234 }
  0xc3   : > { %v1281_v9 = vpop.permute.xlu1 %1280  ;;  %v1471_v0 = vsel %vm1467_vm10, %v1454_v35, %v3099_v44 }
  0xc4   : > { %v1494_v45 = vsel %vm1484_vm11, %v1477_v16, %v1281_v9 }
  0xc6   : > { %v1273_v47 = vpop.permute.xlu0 %1272 }
  0xc7   : > { %v1283_v54 = vpop.permute.xlu1 %1282  ;;  %v1486_v46 = vsel %vm1484_vm11, %v1469_v21, %v1273_v47  ;;  %v1901_v21 = vcombine.low %v2749_v15, %v2756_v30 }
  0xc8   : > { %v1496_v14 = vsel %vm1484_vm11, %v1479_v34, %v1283_v54 }
  0xca   : > { %v3101_v41 = vpop.permute.xlu0 %1274 }
  0xcb   : > { %v1321_v27 = vpop.permute.xlu1 %1320  ;;  %v1488_v26 = vsel %vm1484_vm11, %v1471_v0, %v3101_v41 }
  0xcc   : > { %v1511_v7 = vsel %vm1501_vm12, %v1494_v45, %v1321_v27  ;;  %v2142_v45 = vld [vmem:[%s2341_s6 + $0x4c] sm:$0xf]  ;;  %s148_s6 = sand.u32 1, %s2213_s10  }
  0xcd   : > { %s1813_s7 = sshll.u32 %s148_s6, 7  ;;  %s3252_s29 = scalar_lea.sflag [#allocation3], %s148_s6 }
  0xce   : > { %v1313_v22 = vpop.permute.xlu0 %1312  ;;  %s3206_s17 = scalar_lea.vmem [#allocation2], %s1813_s7 }
  0xcf   : > { %v1323_v55 = vpop.permute.xlu1 %1322  ;;  %v1503_v12 = vsel %vm1501_vm12, %v1486_v46, %v1313_v22  ;;  %s1722_s26 = sshll.u32 %s3206_s17, 4  ;;  %s3244_s26 = int_to_ptr.vmem [resolvable:$true] %s1722_s26 }
  0xd0   : > { %v1513_v33 = vsel %vm1501_vm12, %v1496_v14, %v1323_v55  ;;  %s2143_s30 = scalar_lea.vmem %s3244_s26, 2048  ;;  %p2150_p2 = scmp.lt.s32.totalorder %s3244_s26, %s2148_s4 }
  0xd1   : > { %p2144_p13 = scmp.ne.s32.totalorder %s3244_s26, %s2143_s30  ;;  %p2151_p4 = scmp.lt.s32.totalorder %s2149_s5, %s2143_s30 }
  0xd2   : > { %v1315_v2 = vpop.permute.xlu0 %1314 }
  0xd3   : > { %v1361_v59 = vpop.permute.xlu1 %1360  ;;  %v1505_v36 = vsel %vm1501_vm12, %v1488_v26, %v1315_v2  ;;  %p2145_p0 = pnand %p2144_p13, %p2315_p3  ;;  %p2152_p5 = por %p2151_p4, %p2150_p2 }
  0xd4   : > { %v1528_v31 = vsel %vm1518_vm13, %v1511_v7, %v1361_v59  ;;  %v1900_v7 = vcombine.low %v2141_v57, %v2142_v45 }
  0xd5   : > { %p2146_p1 = pneg %p2145_p0 }
  0xd6   : > { %v1353_v43 = vpop.permute.xlu0 %1352 }
  0xd7   : > { %v1363_v25 = vpop.permute.xlu1 %1362  ;;  %v1520_v38 = vsel %vm1518_vm13, %v1503_v12, %v1353_v43  ;;  %p2153_p6 = pnand %p2152_p5, %p2146_p1 }
  0xd8   : > { %v1530_v40 = vsel %vm1518_vm13, %v1513_v33, %v1363_v25 }
  0xdb   : > { %v1355_v37 = vpop.permute.xlu0 %1354  ;;  %v1401_v4 = vpop.permute.xlu1 %1400 }
  0xdc   : > { %v1545_v49 = vsel %vm1535_vm14, %v1528_v31, %v1401_v4  ;;  %v1522_v54 = vsel %vm1518_vm13, %v1505_v36, %v1355_v37  ;;  %v1896_v4 = vcombine.low %v2725_v3, %v2728_v24 }
  0xdd   : > { %2009 = vmatprep.mubr.msk.bf16.mxu1 %vm1572_vm15, %v1545_v49 }
  0xdf   : > { %v1393_v51 = vpop.permute.xlu0 %1392 }
  0xe0   : > { %v1537_v20 = vsel %vm1535_vm14, %v1520_v38, %v1393_v51  ;;  %v1897_v38 = vcombine.low %v2774_v50, %v2781_v13 }
  0xe1   : > { %2001 = vmatprep.mubr.msk.bf16.mxu0 %vm1572_vm15, %v1537_v20 }
  0xe3   : > { %v1125_v5 = vpop.permute.xlu1 %1124 }
  0xe4   : > { %v1429_v37 = vsel %vm1408_vm7, %v1900_v7, %v1125_v5 }
  0xe7   : > { %v1117_v9 = vpop.permute.xlu0 %1116  ;;  %v1403_v47 = vpop.permute.xlu1 %1402 }
  0xe8   : > { %v1547_v32 = vsel %vm1535_vm14, %v1530_v40, %v1403_v47  ;;  %v1417_v46 = vsel %vm1408_vm7, %v1896_v4, %v1117_v9 }
  0xe9   : > { %2010 = vmatmul.mubr.msk.bf16.vlgmr.msra.gmra.mrb[0].mxu1 %vm1572_vm15, %v1547_v32 }
  0xeb   : > { %v1395_v42 = vpop.permute.xlu0 %1394 }
  0xec   : > { %v1539_v60 = vsel %vm1535_vm14, %v1522_v54, %v1395_v42 }
  0xed   : > { %2002 = vmatmul.mubr.msk.bf16.vlgmr.msra.gmra.mrb[0].mxu0 %vm1572_vm15, %v1539_v60 }
  0xf1   : > { %v1127_v17 = vpop.permute.xlu1 %1126 }
  0xf2   : > { %v1432_v12 = vsel %vm1408_vm7, %v1901_v21, %v1127_v17 }
  0xf3   : > { %v1119_v27 = vpop.permute.xlu0 %1118 }
  0xf4   : > { %v1420_v62 = vsel %vm1408_vm7, %v1897_v38, %v1119_v27 }
  0xf5   : > { %v1165_v22 = vpop.permute.xlu1 %1164 }
  0xf6   : > { %v1447_v49 = vsel %vm1433_vm8, %v1429_v37, %v1165_v22 }
  0xf7   : > { %v1157_v44 = vpop.permute.xlu0 %1156 }
  0xf8   : > { %v1439_v24 = vsel %vm1433_vm8, %v1417_v46, %v1157_v44 }
  0xf9   : > { %v1167_v52 = vpop.permute.xlu1 %1166 }
  0xfa   : > { %v1449_v15 = vsel %vm1433_vm8, %v1432_v12, %v1167_v52 }
  0xfb   : > { %v1159_v55 = vpop.permute.xlu0 %1158 }
  0xfc   : > { %v1441_v33 = vsel %vm1433_vm8, %v1420_v62, %v1159_v55 }
  0xfd   : > { %v1205_v11 = vpop.permute.xlu1 %1204 }
  0xfe   : > { %v1464_v61 = vsel %vm1450_vm9, %v1447_v49, %v1205_v11 }
  0xff   : > { %v1197_v41 = vpop.permute.xlu0 %1196 }
 0x100   : > { %v1456_v51 = vsel %vm1450_vm9, %v1439_v24, %v1197_v41 }
 0x101   : > { %v1207_v19 = vpop.permute.xlu1 %1206 }
 0x102   : > { %v1466_v1 = vsel %vm1450_vm9, %v1449_v15, %v1207_v19 }
 0x103   : > { %v1199_v58 = vpop.permute.xlu0 %1198 }
 0x104   : > { %v1458_v9 = vsel %vm1450_vm9, %v1441_v33, %v1199_v58 }
 0x105   : > { %v1245_v18 = vpop.permute.xlu1 %1244 }
 0x106   : > { %v1481_v56 = vsel %vm1467_vm10, %v1464_v61, %v1245_v18 }
 0x107   : > { %v1237_v2 = vpop.permute.xlu0 %1236 }
 0x108   : > { %v1473_v5 = vsel %vm1467_vm10, %v1456_v51, %v1237_v2 }
 0x109   : > { %v1247_v59 = vpop.permute.xlu1 %1246 }
 0x10a   : > { %v1483_v50 = vsel %vm1467_vm10, %v1466_v1, %v1247_v59 }
 0x10c   : > { %v1239_v63 = vpop.permute.xlu0 %1238 }
 0x10d   : > { %v1285_v23 = vpop.permute.xlu1 %1284  ;;  %v1475_v36 = vsel %vm1467_vm10, %v1458_v9, %v1239_v63 }
 0x10e   : > { %v1498_v3 = vsel %vm1484_vm11, %v1481_v56, %v1285_v23 }
 0x110   : > { %v1277_v43 = vpop.permute.xlu0 %1276 }
 0x111   : > { %v1287_v25 = vpop.permute.xlu1 %1286  ;;  %v1490_v34 = vsel %vm1484_vm11, %v1473_v5, %v1277_v43 }
 0x112   : > { %v1500_v14 = vsel %vm1484_vm11, %v1483_v50, %v1287_v25 }
 0x114   : > { %v1279_v29 = vpop.permute.xlu0 %1278 }
 0x115   : > { %v1325_v16 = vpop.permute.xlu1 %1324  ;;  %v1492_v60 = vsel %vm1484_vm11, %v1475_v36, %v1279_v29 }
 0x116   : > { %v1515_v30 = vsel %vm1501_vm12, %v1498_v3, %v1325_v16 }
 0x118   : > { %v1317_v39 = vpop.permute.xlu0 %1316 }
 0x119   : > { %v1327_v53 = vpop.permute.xlu1 %1326  ;;  %v1507_v35 = vsel %vm1501_vm12, %v1490_v34, %v1317_v39 }
 0x11a   : > { %v1517_v40 = vsel %vm1501_vm12, %v1500_v14, %v1327_v53 }
 0x11c   : > { %v1319_v8 = vpop.permute.xlu0 %1318 }
 0x11d   : > { %v1365_v31 = vpop.permute.xlu1 %1364  ;;  %v1509_v17 = vsel %vm1501_vm12, %v1492_v60, %v1319_v8 }
 0x11e   : > { %v1532_v20 = vsel %vm1518_vm13, %v1515_v30, %v1365_v31 }
 0x120   : > { %v1357_v6 = vpop.permute.xlu0 %1356 }
 0x121   : > { %v1367_v48 = vpop.permute.xlu1 %1366  ;;  %v1524_v47 = vsel %vm1518_vm13, %v1507_v35, %v1357_v6 }
 0x122   : > { %v1534_v0 = vsel %vm1518_vm13, %v1517_v40, %v1367_v48 }
 0x125   : > { %v1359_v10 = vpop.permute.xlu0 %1358  ;;  %v1405_v28 = vpop.permute.xlu1 %1404 }
 0x126   : > { %v1549_v13 = vsel %vm1535_vm14, %v1532_v20, %v1405_v28  ;;  %v1526_v27 = vsel %vm1518_vm13, %v1509_v17, %v1359_v10 }
 0x127   : > { %2013 = vmatprep.mubr.msk.bf16.mxu1 %vm1572_vm15, %v1549_v13 }
 0x129   : > { %v1397_v32 = vpop.permute.xlu0 %1396  ;;  %v1407_v26 = vpop.permute.xlu1 %1406 }
 0x12a   : > { %v1541_v54 = vsel %vm1535_vm14, %v1524_v47, %v1397_v32  ;;  %v1551_v42 = vsel %vm1535_vm14, %v1534_v0, %v1407_v26 }
 0x12b   : > { %2005 = vmatprep.mubr.msk.bf16.mxu0 %vm1572_vm15, %v1541_v54  ;;  %2014 = vmatmul.mubr.msk.bf16.gmra.mrb[4].mxu1 %vm1572_vm15, %v1551_v42 }
 0x12d   : > { %v1399_v22 = vpop.permute.xlu0 %1398 }
 0x12e   : > { %v1543_v44 = vsel %vm1535_vm14, %v1526_v27, %v1399_v22 }
 0x12f   : > { %2006 = vmatmul.mubr.msk.bf16.gmra.mrb[4].mxu0 %vm1572_vm15, %v1543_v44 }
 0x1bc   : > { %v2011_v52 = vpop.f32.mrb[0].mxu1 }
 0x1bd   : > { %1700 = vst.msk [vmem:[%s3206_s17 + $0x50] sm:$0xff] %vm1535_vm14, %v2011_v52  ;;  %v1659_v55 = vpop.f32.mrb[1].mxu1 }
 0x1be   : > { %1698 = vst.msk [vmem:[%s3206_s17 + $0x40] sm:$0xff] %vm1535_vm14, %v1659_v55  ;;  %v2012_v11 = vpop.f32.mrb[2].mxu1 }
 0x1bf   : > { %1701 = vst.msk [vmem:[%s3206_s17 + $0x58] sm:$0xff] %vm1535_vm14, %v2012_v11  ;;  %v1662_v41 = vpop.f32.mrb[3].mxu1 }
 0x1c0   : > { %v2003_v19 = vpop.f32.mrb[0].mxu0  ;;  %1699 = vst.msk [vmem:[%s3206_s17 + $0x48] sm:$0xff] %vm1535_vm14, %v1662_v41 }
 0x1c1   : > { %1692 = vst.msk [vmem:[%s3206_s17 + $0x10] sm:$0xff] %vm1535_vm14, %v2003_v19  ;;  %v1627_v58 = vpop.f32.mrb[1].mxu0 }
 0x1c2   : > { %1690 = vst.msk [vmem:[%s3206_s17] sm:$0xff] %vm1535_vm14, %v1627_v58  ;;  %v2004_v18 = vpop.f32.mrb[2].mxu0 }
 0x1c3   : > { %1693 = vst.msk [vmem:[%s3206_s17 + $0x18] sm:$0xff] %vm1535_vm14, %v2004_v18  ;;  %v1630_v2 = vpop.f32.mrb[3].mxu0 }
 0x1c4   : > { %1691 = vst.msk [vmem:[%s3206_s17 + $0x8] sm:$0xff] %vm1535_vm14, %v1630_v2 }
 0x1fe   : > { %v2015_v59 = vpop.f32.mrb[4].mxu1 }
 0x1ff   : > { %1704 = vst.msk [vmem:[%s3206_s17 + $0x70] sm:$0xff] %vm1535_vm14, %v2015_v59  ;;  %v1675_v63 = vpop.f32.mrb[5].mxu1 }
 0x200   : > { %1702 = vst.msk [vmem:[%s3206_s17 + $0x60] sm:$0xff] %vm1535_vm14, %v1675_v63  ;;  %v2016_v23 = vpop.f32.mrb[6].mxu1 }
 0x201   : > { %1705 = vst.msk [vmem:[%s3206_s17 + $0x78] sm:$0xff] %vm1535_vm14, %v2016_v23  ;;  %v1678_v43 = vpop.f32.mrb[7].mxu1 }
 0x202   : > { %v2007_v25 = vpop.f32.mrb[4].mxu0  ;;  %1703 = vst.msk [vmem:[%s3206_s17 + $0x68] sm:$0xff] %vm1535_vm14, %v1678_v43 }
 0x203   : > { %1696 = vst.msk [vmem:[%s3206_s17 + $0x30] sm:$0xff] %vm1535_vm14, %v2007_v25  ;;  %v1643_v29 = vpop.f32.mrb[5].mxu0 }
 0x204   : > { %1694 = vst.msk [vmem:[%s3206_s17 + $0x20] sm:$0xff] %vm1535_vm14, %v1643_v29  ;;  %v2008_v16 = vpop.f32.mrb[6].mxu0 }
 0x205   : > { %1697 = vst.msk [vmem:[%s3206_s17 + $0x38] sm:$0xff] %vm1535_vm14, %v2008_v16  ;;  %v1646_v39 = vpop.f32.mrb[7].mxu0 }
 0x206   : > { %1695 = vst.msk [vmem:[%s3206_s17 + $0x28] sm:$0xff] %vm1535_vm14, %v1646_v39 }
 0x207   : > { %2156 = shalt.err (!%p2153_p6)
}
 0x208   : > { %s2157_s6 = scalar_lea.hbm %s3240_s28, 2048  ;;  %s2161_s18 = scalar_lea.hbm %s3307_s2, 8192 }
 0x209   : > { %p2158_p7 = scmp.ne.s32.totalorder %s3240_s28, %s2157_s6  ;;  %p2162_p11 = scmp.lt.u32.totalorder %s3240_s28, %s3307_s2 }
 0x20a   : > { %p2163_p12 = scmp.lt.u32.totalorder %s2161_s18, %s2157_s6  ;;  %p2165_p0 = scmp.lt.u32.totalorder %s2157_s6, %s3240_s28 }
 0x20b   : > { %p2159_p9 = pnand %p2158_p7, %p2315_p3 }
 0x20c   : > { %p2164_p13 = por %p2163_p12, %p2162_p11 }
 0x20d   : > { %p2160_p10 = pneg %p2159_p9 }
 0x20e   : > { %p2166_p1 = por %p2165_p0, %p2164_p13 }
 0x210   : > { %p2167_p2 = pnand %p2166_p1, %p2160_p10 }
 0x212   : > { %2170 = shalt.err (!%p2167_p2)
}
 0x213   : > { %s2248_s25 = smov 128  }
 0x214   : > { %2026 = dma.vmem_to_hbm [thread:$0]  (%p2315_p3), %s3244_s26, 2048, %s3240_s28, %s3252_s29, %s2248_s25, %s2248_s25, %s2240_s8  }
 0x215 PF: > { %p2032_p4 = scmp.ge.s32.totalorder %s2237_s16, 2  ;;  %s1737_s12 = sand.u32 1, %s2209_s9  }
 0x216   : > { %s1738_s13 = scalar_lea.sflag [#allocation3], %s1737_s12 }
 0x217   : > { %p2029_p5 = pnand %p2032_p4, %p2324_p8 }
 0x219   : > { %2204 = dma.done.wait (!%p2029_p5), %s1738_s13, 2048  }
 0x21a   : > { %2206 = vsyncadd (!%p2029_p5), %s1738_s13, 4294965248  ;;  %s15_s16 = sadd.s32 1, %s2237_s16   ;;  %s3314_s9 = smov %s2213_s10 }
 0x21b   : > { %p12_p6 = scmp.ge.s32.totalorder %s15_s16, 6   ;;  %s3315_s10 = smov %s2217_s11 }
 0x21c   : > { %s3316_s11 = smov %s2333_s27  ;;  %s3317_s12 = smov %s2229_s14 }
 0x21d   : > { %s3318_s13 = smov %s2233_s15  ;;  %s3319_s14 = smov %s3322_s19 }
 0x21e   : > { %s3320_s15 = smov %s3326_s20  ;;  %14 = sbr.rel (!%p12_p6) target bundleno = 5 (0x5), region = 66 }
 0x225   :  { %1743 = vsyncpa [#allocation3], 1 }
 0x226   :  { %1745 = vsyncpa [#allocation3 + $0x1], 1 }

</bundles_post_ra>
